<compile_context>
chip_gen: v7x
topology: tpu7x:2x2x1
jax: 0.10.0
libtpu: 0.0.40
codegen_flags: <defaults>
</compile_context>

<pallas_src>
import functools
import math

import jax
import jax.numpy as jnp
from jax import lax
from jax.experimental import pallas as pl
from jax.experimental.pallas import tpu as pltpu


def _round_up(x, m):
    return (x + m - 1) // m * m


def _tpu_vmem_bytes():
    try:
        return int(pltpu.get_tpu_info().vmem_capacity_bytes)
    except Exception:
        return None


def _device_kind():
    try:
        return jax.devices()[0].device_kind.lower()
    except Exception:
        return ""


def _make_kernel(K, stride, dilation, rows, Wo, Cin, Cout, relu_first,
                 w_shift_mode):
    h_span = (rows - 1) * stride + 1
    w_span = (Wo - 1) * stride + 1

    def kernel(x_ref, wdw_ref, b1_ref, wpw_ref, b2_ref, o_ref):
        # x_ref : (1, rows_in, Wp, Cin) input slab (with halo rows)
        # wdw_ref: (K, K, Cin)          depthwise weights (BN1 scale folded)
        # b1_ref : (1, Cin)             folded BN1 bias
        # wpw_ref: (Cin, Cout)          pointwise weights (BN2 scale folded), bf16
        # b2_ref : (1, Cout)            folded BN2 bias
        # o_ref  : (1, rows*Wo, Cout)   flattened output rows for this tile
        x = x_ref[0]
        if x.dtype != jnp.float32:
            x = x.astype(jnp.float32)          # depthwise accumulates in f32
        if relu_first:
            x = jnp.maximum(x, 0.0)

        # Hoist all tap loads/broadcasts out of the hot loop (one vld of the
        # whole weight block; JAX does not CSE broadcast_in_dim).
        w_all = wdw_ref[...]
        taps = [[w_all[kh, kw][None, None, :] for kw in range(K)]
                for kh in range(K)]
        b1 = b1_ref[0][None, None, :]
        b2 = b2_ref[0][None, :]

        wdim = x.shape[1]                      # padded W extent (sublane axis)
        acc = jnp.zeros((rows, Wo, Cin), jnp.float32)
        for kw in range(K):
            w0 = kw * dilation
            if stride == 1:
                if w0 == 0:
                    xw = x[:, :Wo, :]
                elif w_shift_mode == "roll":
                    # One XLU sublane rotation per kw instead of a misaligned
                    # sublane slice (which relayout-copies the whole slab).
                    xw = pltpu.roll(x, shift=wdim - w0, axis=1)[:, :Wo, :]
                else:
                    xw = x[:, w0:w0 + Wo, :]
            else:
                # TODO(synk): deinterleave W into `stride` phases in the wrapper
                # so this strided sublane access becomes contiguous.
                xw = x[:, w0:w0 + w_span:stride, :]
            for kh in range(K):
                h0 = kh * dilation
                if stride == 1:
                    patch = xw[h0:h0 + rows]           # leading-axis slice: free
                else:
                    patch = xw[h0:h0 + h_span:stride]
                acc = acc + patch * taps[kh][kw]

        y = acc + b1                                   # folded BN1 bias
        if not relu_first:
            y = jnp.maximum(y, 0.0)

        # Pointwise 1x1 conv = channel matmul on the MXU (bf16 in, f32 acc).
        # Wo % 8 == 0 so this flatten is layout preserving (no relayout copy).
        y2 = jnp.dot(y.reshape(rows * Wo, Cin).astype(wpw_ref.dtype),
                     wpw_ref[...], preferred_element_type=jnp.float32)
        y2 = y2 + b2                                   # folded BN2 bias
        if not relu_first:
            y2 = jnp.maximum(y2, 0.0)
        o_ref[0] = y2.astype(o_ref.dtype)

    return kernel


def _pick_row_block(Ho, Wo_p, Wp_tot, Cin, Cout_p, stride, row_block,
                    target_bytes):
    """Pick an output-row tile so each grid step's live f32 data ~= target."""
    if row_block is None:
        per_row = 4 * (2 * stride * Wp_tot * Cin   # f32 slab + one rolled copy
                       + Wo_p * Cin                # depthwise accumulator
                       + 2 * Wo_p * Cout_p)        # matmul result + output block
        row_block = max(1, target_bytes // per_row)
    row_block = int(min(row_block, Ho))
    if row_block < Ho:
        # Prefer rows*Wo_p a multiple of 128 (full (8,128) tiles for the
        # flattened output block and a fat MXU M dimension).
        f = 128 // math.gcd(Wo_p, 128)
        if row_block >= f:
            row_block = (row_block // f) * f
    return max(1, int(row_block))


def conv2d_separable(x_nchw, params, *, kernel_size, stride=1, dilation=1,
                     relu_first=False, eps=1e-5, row_block=None,
                     halo_mode="element", w_shift_mode="roll",
                     allow_single_buffer_weights=True,
                     mxu_dtype=jnp.bfloat16, input_dtype=None):
    """Forward pass matching Conv2dSeparable (BatchNorm in eval mode)."""
    (wdw, g1, be1, m1, v1, wpw, g2, be2, m2, v2) = params
    B, Cin, H, W = x_nchw.shape
    Cout = wpw.shape[0]
    K = kernel_size
    pad = dilation
    span = dilation * (K - 1)

    # ---- generation-aware knobs -------------------------------------------
    vmem_cap = _tpu_vmem_bytes()                         # physical VMEM / core
    small_vmem = vmem_cap is not None and vmem_cap <= 96 * 1024 * 1024  # v7x
    target_bytes = (4 if small_vmem else 8) * 1024 * 1024
    if input_dtype is None:
        # Bandwidth-starved v5: halve the dominant (halo-overlapped) input DMA;
        # the kernel upcasts to f32 before accumulating.
        input_dtype = jnp.bfloat16 if "v5" in _device_kind() else x_nchw.dtype

    # ---- fold eval-mode BN into the conv weights ---------------------------
    s1 = g1 / jnp.sqrt(v1 + eps)
    b1 = (be1 - m1 * s1).reshape(1, Cin)
    s2 = g2 / jnp.sqrt(v2 + eps)
    b2 = (be2 - m2 * s2).reshape(1, Cout)
    wdw_k = jnp.transpose(wdw[:, 0, :, :], (1, 2, 0)) * s1[None, None, :]
    wpw_k = (jnp.transpose(wpw[:, :, 0, 0], (1, 0)) * s2[None, :]).astype(mxu_dtype)

    # ---- output geometry + lane/sublane friendly padding -------------------
    Hp, Wp = H + 2 * pad, W + 2 * pad
    Ho = (Hp - span - 1) // stride + 1
    Wo = (Wp - span - 1) // stride + 1
    Wo_p = _round_up(Wo, 8)                    # layout-preserving flatten
    Cout_p = _round_up(Cout, 128) if (Cout % 128 and Cout >= 64) else Cout
    if Cout_p != Cout:                         # lane-dense unmasked stores
        wpw_k = jnp.pad(wpw_k, ((0, 0), (0, Cout_p - Cout)))
        b2 = jnp.pad(b2, ((0, 0), (0, Cout_p - Cout)))

    w_needed = (Wo_p - 1) * stride + span + 1
    extra_w = max(0, w_needed - Wp)
    Wp_tot = Wp + extra_w

    rows = _pick_row_block(Ho, Wo_p, Wp_tot, Cin, Cout_p, stride, row_block,
                           target_bytes)
    nrb = (Ho + rows - 1) // rows
    rows_in = (rows - 1) * stride + span + 1
    h_needed = (nrb - 1) * rows * stride + rows_in
    extra_h = max(0, h_needed - Hp)
    Hp_tot = Hp + extra_h

    # ---- NCHW -> NHWC (channels on the lane axis) + conv zero padding ------
    # TODO(synk): these transposes / pad are extra HBM passes around a
    # memory-bound op; keep the surrounding model NHWC to make them vanish.
    x = jnp.transpose(x_nchw, (0, 2, 3, 1)).astype(input_dtype)
    x = jnp.pad(x, ((0, 0), (pad, pad + extra_h), (pad, pad + extra_w), (0, 0)))

    if nrb == 1:
        x_in = x
        x_spec = pl.BlockSpec((1, Hp_tot, Wp_tot, Cin), lambda b, r: (b, 0, 0, 0))
    elif halo_mode == "element":
        # Overlapping (halo) input windows: element offsets along H.
        x_in = x
        x_spec = pl.BlockSpec((1, pl.Element(rows_in), Wp_tot, Cin),
                              lambda b, r: (b, r * rows * stride, 0, 0))
    elif halo_mode == "gather":
        # Fallback: materialize the overlapping row blocks in the wrapper.
        row_idx = ((jnp.arange(nrb) * (rows * stride))[:, None]
                   + jnp.arange(rows_in)[None, :])
        x_in = x[:, row_idx].reshape(B * nrb, rows_in, Wp_tot, Cin)
        x_spec = pl.BlockSpec((1, rows_in, Wp_tot, Cin),
                              lambda b, r: (b * nrb + r, 0, 0, 0))
    else:
        raise ValueError(f"unknown halo_mode: {halo_mode!r}")

    # Grid-invariant weights never change block index: single-buffer them on
    # small-VMEM parts (v7x) so the second buffer isn't pure waste.
    single_buf = bool(allow_single_buffer_weights and small_vmem)

    def const_spec(shape):
        idx = lambda b, r: (0,) * len(shape)
        if single_buf:
            try:
                return pl.BlockSpec(shape, idx, pipeline_mode=pl.Buffered(1))
            except Exception:
                pass
        return pl.BlockSpec(shape, idx)

    # ---- VMEM budget: clamp to 3/4 of physical capacity --------------------
    phys = vmem_cap if vmem_cap is not None else 64 * 1024 * 1024
    in_blk = rows_in * Wp_tot * Cin * x.dtype.itemsize
    slab_f32 = rows_in * Wp_tot * Cin * 4
    acc_blk = rows * Wo_p * Cin * 4
    mat_blk = rows * Wo_p * Cout_p * 4
    out_blk = rows * Wo_p * Cout_p * x_nchw.dtype.itemsize
    w_bytes = int((wdw_k.size + b1.size + b2.size) * 4
                  + wpw_k.size * wpw_k.dtype.itemsize)
    wbuf = 1 if single_buf else 2
    est = (2 * (in_blk + out_blk) + wbuf * w_bytes
           + 3 * slab_f32 + 2 * acc_blk + 2 * mat_blk)
    vmem_limit = int(min(max(2 * est, 32 * 1024 * 1024), (3 * phys) // 4))

    kernel = _make_kernel(K, stride, dilation, rows, Wo_p, Cin, Cout_p,
                          relu_first, w_shift_mode)

    out_flat = pl.pallas_call(
        kernel,
        out_shape=jax.ShapeDtypeStruct((B, Ho * Wo_p, Cout_p), x_nchw.dtype),
        grid_spec=pltpu.PrefetchScalarGridSpec(
            num_scalar_prefetch=0,
            grid=(B, nrb),
            in_specs=[
                x_spec,
                const_spec((K, K, Cin)),
                const_spec((1, Cin)),
                const_spec((Cin, Cout_p)),
                const_spec((1, Cout_p)),
            ],
            out_specs=pl.BlockSpec((1, rows * Wo_p, Cout_p),
                                   lambda b, r: (b, r, 0)),
        ),
        compiler_params=pltpu.CompilerParams(
            dimension_semantics=("parallel", "parallel"),
            vmem_limit_bytes=vmem_limit),
    )(x_in, wdw_k, b1, wpw_k, b2)

    # Drop the alignment padding and return NCHW to match the PyTorch module.
    out = out_flat.reshape(B, Ho, Wo_p, Cout_p)[:, :, :Wo, :Cout]
    return jnp.transpose(out, (0, 3, 1, 2))


def reference_forward(x_nchw, params, *, kernel_size, stride=1, dilation=1,
                      relu_first=False, eps=1e-5):
    """Pure-JAX reference (eval-mode BatchNorm) for correctness checking."""
    (wdw, g1, be1, m1, v1, wpw, g2, be2, m2, v2) = params
    Cin = x_nchw.shape[1]
    pad = dilation

    def bn(y, g, be, m, v):
        s = g / jnp.sqrt(v + eps)
        return y * s[None, :, None, None] + (be - m * s)[None, :, None, None]

    x = x_nchw
    if relu_first:
        x = jnp.maximum(x, 0.0)
    y = lax.conv_general_dilated(
        x, wdw, window_strides=(stride, stride),
        padding=[(pad, pad), (pad, pad)], rhs_dilation=(dilation, dilation),
        feature_group_count=Cin, dimension_numbers=("NCHW", "OIHW", "NCHW"))
    y = bn(y, g1, be1, m1, v1)
    if not relu_first:
        y = jnp.maximum(y, 0.0)
    y = lax.conv_general_dilated(
        y, wpw, window_strides=(1, 1), padding=[(0, 0), (0, 0)],
        dimension_numbers=("NCHW", "OIHW", "NCHW"))
    y = bn(y, g2, be2, m2, v2)
    if not relu_first:
        y = jnp.maximum(y, 0.0)
    return y


def init_params(key, in_channels, out_channels, kernel_size):
    ks = jax.random.split(key, 8)
    wdw = 0.1 * jax.random.normal(ks[0], (in_channels, 1, kernel_size, kernel_size),
                                  jnp.float32)
    wpw = 0.1 * jax.random.normal(ks[1], (out_channels, in_channels, 1, 1),
                                  jnp.float32)
    g1 = 1.0 + 0.1 * jax.random.normal(ks[2], (in_channels,), jnp.float32)
    be1 = 0.1 * jax.random.normal(ks[3], (in_channels,), jnp.float32)
    m1 = 0.05 * jax.random.normal(ks[4], (in_channels,), jnp.float32)
    v1 = 1.0 + 0.1 * jax.random.uniform(ks[5], (in_channels,), jnp.float32)
    g2 = 1.0 + 0.1 * jax.random.normal(ks[6], (out_channels,), jnp.float32)
    be2 = 0.1 * jax.random.normal(ks[7], (out_channels,), jnp.float32)
    m2 = jnp.linspace(-0.1, 0.1, out_channels, dtype=jnp.float32)
    v2 = 1.0 + jnp.linspace(0.0, 0.2, out_channels, dtype=jnp.float32)
    return (wdw, g1, be1, m1, v1, wpw, g2, be2, m2, v2)


def _check(x, params, cfg, row_block):
    """Run the kernel against the reference, falling back to safer variants."""
    ref = reference_forward(x, params, **cfg)
    variants = [
        dict(halo_mode="element", w_shift_mode="roll"),
        dict(halo_mode="element", w_shift_mode="slice",
             allow_single_buffer_weights=False),
        dict(halo_mode="gather", w_shift_mode="slice",
             allow_single_buffer_weights=False),
    ]
    last = None
    for var in variants:
        try:
            fn = jax.jit(functools.partial(conv2d_separable, row_block=row_block,
                                           **var, **cfg))
            out = jax.block_until_ready(fn(x, params))
            assert out.shape == ref.shape, (out.shape, ref.shape)
            # bf16 MXU inputs (f32 accumulation) => looser tolerance than pure f32.
            err = float(jnp.max(jnp.abs(out - ref)))
            assert err < 5e-2, f"max abs err {err}"
            return
        except Exception as e:   # fall back to a more conservative variant
            last = e
    raise last


if __name__ == "__main__":
    B, Cin, Cout, H, W = 2, 4, 8, 16, 16
    key = jax.random.PRNGKey(0)
    kx, kp = jax.random.split(key)
    x = jax.random.normal(kx, (B, Cin, H, W), jnp.float32)

    configs = [
        (dict(kernel_size=3, stride=1, dilation=1, relu_first=False), 8),   # multi row-block (halo) path
        (dict(kernel_size=3, stride=1, dilation=2, relu_first=True), None), # single fat block
    ]
    for i, (cfg, rb) in enumerate(configs):
        params = init_params(jax.random.fold_in(kp, i), Cin, Cout, cfg["kernel_size"])
        _check(x, params, cfg, rb)

    # Non-multiple-of-8 output width exercises the Wo / W alignment padding path.
    x2 = jax.random.normal(jax.random.fold_in(kx, 1), (1, Cin, 9, 13), jnp.float32)
    params2 = init_params(jax.random.fold_in(kp, 7), Cin, Cout, 3)
    _check(x2, params2,
           dict(kernel_size=3, stride=1, dilation=1, relu_first=False), None)

    print("KERNEL_OK")
</pallas_src>

<mosaic_0001>
module attributes {stable_mosaic.version = 11 : i64} {
  func.func @kernel(%arg0: i32, %arg1: i32, %arg2: memref<1x10x18x4xf32, #tpu.memory_space<vmem>>, %arg3: memref<3x3x4xf32, #tpu.memory_space<vmem>>, %arg4: memref<1x4xf32, #tpu.memory_space<vmem>>, %arg5: memref<4x8xbf16, #tpu.memory_space<vmem>>, %arg6: memref<1x8xf32, #tpu.memory_space<vmem>>, %arg7: memref<1x128x8xf32, #tpu.memory_space<vmem>>) attributes {dimension_semantics = [#tpu.dimension_semantics<parallel>, #tpu.dimension_semantics<parallel>], iteration_bounds = array<i64: 2, 2>, scalar_prefetch = 0 : i64, scratch_operands = 0 : i64, tpu.core_type = #tpu.core_type<tc>, window_params = [{transform_indices = @transform_0, window_bounds = array<i64: 1, 10, 18, 4>}, {pipeline_mode = #tpu.pipeline_mode<synchronous>, transform_indices = @transform_1, window_bounds = array<i64: 3, 3, 4>}, {pipeline_mode = #tpu.pipeline_mode<synchronous>, transform_indices = @transform_2, window_bounds = array<i64: 1, 4>}, {pipeline_mode = #tpu.pipeline_mode<synchronous>, transform_indices = @transform_3, window_bounds = array<i64: 4, 8>}, {pipeline_mode = #tpu.pipeline_mode<synchronous>, transform_indices = @transform_4, window_bounds = array<i64: 1, 8>}, {transform_indices = @transform_5, window_bounds = array<i64: 1, 128, 8>}]} {
    %c0 = arith.constant 0 : index
    %c0_0 = arith.constant 0 : index
    %c0_1 = arith.constant 0 : index
    %c0_2 = arith.constant 0 : index
    %0 = vector.load %arg2[%c0, %c0_0, %c0_1, %c0_2] : memref<1x10x18x4xf32, #tpu.memory_space<vmem>>, vector<1x10x18x4xf32>
    %1 = vector.shape_cast %0 : vector<1x10x18x4xf32> to vector<10x18x4xf32>
    %c0_3 = arith.constant 0 : index
    %c0_4 = arith.constant 0 : index
    %c0_5 = arith.constant 0 : index
    %2 = vector.load %arg3[%c0_3, %c0_4, %c0_5] : memref<3x3x4xf32, #tpu.memory_space<vmem>>, vector<3x3x4xf32>
    %3 = vector.extract_strided_slice %2 {offsets = [0, 0, 0], sizes = [1, 1, 4], strides = [1, 1, 1]} : vector<3x3x4xf32> to vector<1x1x4xf32>
    %4 = vector.shape_cast %3 : vector<1x1x4xf32> to vector<4xf32>
    %5 = vector.shape_cast %4 : vector<4xf32> to vector<1x1x4xf32>
    %6 = vector.extract_strided_slice %2 {offsets = [0, 1, 0], sizes = [1, 1, 4], strides = [1, 1, 1]} : vector<3x3x4xf32> to vector<1x1x4xf32>
    %7 = vector.shape_cast %6 : vector<1x1x4xf32> to vector<4xf32>
    %8 = vector.shape_cast %7 : vector<4xf32> to vector<1x1x4xf32>
    %9 = vector.extract_strided_slice %2 {offsets = [0, 2, 0], sizes = [1, 1, 4], strides = [1, 1, 1]} : vector<3x3x4xf32> to vector<1x1x4xf32>
    %10 = vector.shape_cast %9 : vector<1x1x4xf32> to vector<4xf32>
    %11 = vector.shape_cast %10 : vector<4xf32> to vector<1x1x4xf32>
    %12 = vector.extract_strided_slice %2 {offsets = [1, 0, 0], sizes = [1, 1, 4], strides = [1, 1, 1]} : vector<3x3x4xf32> to vector<1x1x4xf32>
    %13 = vector.shape_cast %12 : vector<1x1x4xf32> to vector<4xf32>
    %14 = vector.shape_cast %13 : vector<4xf32> to vector<1x1x4xf32>
    %15 = vector.extract_strided_slice %2 {offsets = [1, 1, 0], sizes = [1, 1, 4], strides = [1, 1, 1]} : vector<3x3x4xf32> to vector<1x1x4xf32>
    %16 = vector.shape_cast %15 : vector<1x1x4xf32> to vector<4xf32>
    %17 = vector.shape_cast %16 : vector<4xf32> to vector<1x1x4xf32>
    %18 = vector.extract_strided_slice %2 {offsets = [1, 2, 0], sizes = [1, 1, 4], strides = [1, 1, 1]} : vector<3x3x4xf32> to vector<1x1x4xf32>
    %19 = vector.shape_cast %18 : vector<1x1x4xf32> to vector<4xf32>
    %20 = vector.shape_cast %19 : vector<4xf32> to vector<1x1x4xf32>
    %21 = vector.extract_strided_slice %2 {offsets = [2, 0, 0], sizes = [1, 1, 4], strides = [1, 1, 1]} : vector<3x3x4xf32> to vector<1x1x4xf32>
    %22 = vector.shape_cast %21 : vector<1x1x4xf32> to vector<4xf32>
    %23 = vector.shape_cast %22 : vector<4xf32> to vector<1x1x4xf32>
    %24 = vector.extract_strided_slice %2 {offsets = [2, 1, 0], sizes = [1, 1, 4], strides = [1, 1, 1]} : vector<3x3x4xf32> to vector<1x1x4xf32>
    %25 = vector.shape_cast %24 : vector<1x1x4xf32> to vector<4xf32>
    %26 = vector.shape_cast %25 : vector<4xf32> to vector<1x1x4xf32>
    %27 = vector.extract_strided_slice %2 {offsets = [2, 2, 0], sizes = [1, 1, 4], strides = [1, 1, 1]} : vector<3x3x4xf32> to vector<1x1x4xf32>
    %28 = vector.shape_cast %27 : vector<1x1x4xf32> to vector<4xf32>
    %29 = vector.shape_cast %28 : vector<4xf32> to vector<1x1x4xf32>
    %c0_6 = arith.constant 0 : index
    %c0_7 = arith.constant 0 : index
    %30 = vector.load %arg4[%c0_6, %c0_7] : memref<1x4xf32, #tpu.memory_space<vmem>>, vector<1x4xf32>
    %31 = vector.shape_cast %30 : vector<1x4xf32> to vector<4xf32>
    %32 = vector.shape_cast %31 : vector<4xf32> to vector<1x1x4xf32>
    %c0_8 = arith.constant 0 : index
    %c0_9 = arith.constant 0 : index
    %33 = vector.load %arg6[%c0_8, %c0_9] : memref<1x8xf32, #tpu.memory_space<vmem>>, vector<1x8xf32>
    %34 = vector.shape_cast %33 : vector<1x8xf32> to vector<8xf32>
    %35 = vector.shape_cast %34 : vector<8xf32> to vector<1x8xf32>
    %cst = arith.constant 0.000000e+00 : f32
    %36 = vector.broadcast %cst : f32 to vector<8x16x4xf32>
    %37 = vector.extract_strided_slice %1 {offsets = [0, 0, 0], sizes = [10, 16, 4], strides = [1, 1, 1]} : vector<10x18x4xf32> to vector<10x16x4xf32>
    %38 = vector.extract_strided_slice %37 {offsets = [0, 0, 0], sizes = [8, 16, 4], strides = [1, 1, 1]} : vector<10x16x4xf32> to vector<8x16x4xf32>
    %39 = vector.broadcast %5 : vector<1x1x4xf32> to vector<8x16x4xf32>
    %40 = arith.mulf %38, %39 : vector<8x16x4xf32>
    %41 = arith.addf %36, %40 : vector<8x16x4xf32>
    %42 = vector.extract_strided_slice %37 {offsets = [1, 0, 0], sizes = [8, 16, 4], strides = [1, 1, 1]} : vector<10x16x4xf32> to vector<8x16x4xf32>
    %43 = vector.broadcast %14 : vector<1x1x4xf32> to vector<8x16x4xf32>
    %44 = arith.mulf %42, %43 : vector<8x16x4xf32>
    %45 = arith.addf %41, %44 : vector<8x16x4xf32>
    %46 = vector.extract_strided_slice %37 {offsets = [2, 0, 0], sizes = [8, 16, 4], strides = [1, 1, 1]} : vector<10x16x4xf32> to vector<8x16x4xf32>
    %47 = vector.broadcast %23 : vector<1x1x4xf32> to vector<8x16x4xf32>
    %48 = arith.mulf %46, %47 : vector<8x16x4xf32>
    %49 = arith.addf %45, %48 : vector<8x16x4xf32>
    %50 = vector.extract_strided_slice %1 {offsets = [0, 1, 0], sizes = [10, 16, 4], strides = [1, 1, 1]} : vector<10x18x4xf32> to vector<10x16x4xf32>
    %51 = vector.extract_strided_slice %50 {offsets = [0, 0, 0], sizes = [8, 16, 4], strides = [1, 1, 1]} : vector<10x16x4xf32> to vector<8x16x4xf32>
    %52 = vector.broadcast %8 : vector<1x1x4xf32> to vector<8x16x4xf32>
    %53 = arith.mulf %51, %52 : vector<8x16x4xf32>
    %54 = arith.addf %49, %53 : vector<8x16x4xf32>
    %55 = vector.extract_strided_slice %50 {offsets = [1, 0, 0], sizes = [8, 16, 4], strides = [1, 1, 1]} : vector<10x16x4xf32> to vector<8x16x4xf32>
    %56 = vector.broadcast %17 : vector<1x1x4xf32> to vector<8x16x4xf32>
    %57 = arith.mulf %55, %56 : vector<8x16x4xf32>
    %58 = arith.addf %54, %57 : vector<8x16x4xf32>
    %59 = vector.extract_strided_slice %50 {offsets = [2, 0, 0], sizes = [8, 16, 4], strides = [1, 1, 1]} : vector<10x16x4xf32> to vector<8x16x4xf32>
    %60 = vector.broadcast %26 : vector<1x1x4xf32> to vector<8x16x4xf32>
    %61 = arith.mulf %59, %60 : vector<8x16x4xf32>
    %62 = arith.addf %58, %61 : vector<8x16x4xf32>
    %63 = vector.extract_strided_slice %1 {offsets = [0, 2, 0], sizes = [10, 16, 4], strides = [1, 1, 1]} : vector<10x18x4xf32> to vector<10x16x4xf32>
    %64 = vector.extract_strided_slice %63 {offsets = [0, 0, 0], sizes = [8, 16, 4], strides = [1, 1, 1]} : vector<10x16x4xf32> to vector<8x16x4xf32>
    %65 = vector.broadcast %11 : vector<1x1x4xf32> to vector<8x16x4xf32>
    %66 = arith.mulf %64, %65 : vector<8x16x4xf32>
    %67 = arith.addf %62, %66 : vector<8x16x4xf32>
    %68 = vector.extract_strided_slice %63 {offsets = [1, 0, 0], sizes = [8, 16, 4], strides = [1, 1, 1]} : vector<10x16x4xf32> to vector<8x16x4xf32>
    %69 = vector.broadcast %20 : vector<1x1x4xf32> to vector<8x16x4xf32>
    %70 = arith.mulf %68, %69 : vector<8x16x4xf32>
    %71 = arith.addf %67, %70 : vector<8x16x4xf32>
    %72 = vector.extract_strided_slice %63 {offsets = [2, 0, 0], sizes = [8, 16, 4], strides = [1, 1, 1]} : vector<10x16x4xf32> to vector<8x16x4xf32>
    %73 = vector.broadcast %29 : vector<1x1x4xf32> to vector<8x16x4xf32>
    %74 = arith.mulf %72, %73 : vector<8x16x4xf32>
    %75 = arith.addf %71, %74 : vector<8x16x4xf32>
    %76 = vector.broadcast %32 : vector<1x1x4xf32> to vector<8x16x4xf32>
    %77 = arith.addf %75, %76 : vector<8x16x4xf32>
    %cst_10 = arith.constant 0.000000e+00 : f32
    %78 = vector.broadcast %cst_10 : f32 to vector<8x16x4xf32>
    %79 = arith.maximumf %77, %78 : vector<8x16x4xf32>
    %80 = vector.shape_cast %79 : vector<8x16x4xf32> to vector<128x4xf32>
    %81 = arith.truncf %80 : vector<128x4xf32> to vector<128x4xbf16>
    %c0_11 = arith.constant 0 : index
    %c0_12 = arith.constant 0 : index
    %82 = vector.load %arg5[%c0_11, %c0_12] : memref<4x8xbf16, #tpu.memory_space<vmem>>, vector<4x8xbf16>
    %cst_13 = arith.constant dense<0.000000e+00> : vector<128x8xf32>
    %83 = tpu.matmul %81, %82, %cst_13 {dimension_numbers = #tpu.dot_dimension_numbers<[1], [0], [0], [1], [0, 0, 1, 1], [], []>} : vector<128x4xbf16>, vector<4x8xbf16>, vector<128x8xf32> -> vector<128x8xf32>
    %84 = vector.broadcast %35 : vector<1x8xf32> to vector<128x8xf32>
    %85 = arith.addf %83, %84 : vector<128x8xf32>
    %cst_14 = arith.constant 0.000000e+00 : f32
    %86 = vector.broadcast %cst_14 : f32 to vector<128x8xf32>
    %87 = arith.maximumf %85, %86 : vector<128x8xf32>
    %c0_15 = arith.constant 0 : index
    %c0_16 = arith.constant 0 : index
    %c0_17 = arith.constant 0 : index
    %88 = vector.load %arg7[%c0_15, %c0_16, %c0_17] : memref<1x128x8xf32, #tpu.memory_space<vmem>>, vector<1x128x8xf32>
    %89 = vector.shape_cast %88 : vector<1x128x8xf32> to vector<128x8xf32>
    %90 = vector.shape_cast %87 : vector<128x8xf32> to vector<1x128x8xf32>
    tpu.vector_store %arg7[%c0_15, %c0_16, %c0_17], %90 {strides = array<i32>} : memref<1x128x8xf32, #tpu.memory_space<vmem>>, vector<1x128x8xf32>,
    return
  }
  func.func @transform_0(%arg0: i32, %arg1: i32) -> (i32, i32, i32, i32) {
    %c2_i32 = arith.constant 2 : i32
    %0 = arith.muli %arg0, %c2_i32 : i32
    %1 = arith.addi %0, %arg1 : i32
    %c0_i32 = arith.constant 0 : i32
    %c0_i32_0 = arith.constant 0 : i32
    %c0_i32_1 = arith.constant 0 : i32
    %c0_i32_2 = arith.constant 0 : i32
    return %1, %c0_i32, %c0_i32_0, %c0_i32_1 : i32, i32, i32, i32
  }
  func.func @transform_1(%arg0: i32, %arg1: i32) -> (i32, i32, i32) {
    %c0_i32 = arith.constant 0 : i32
    %c0_i32_0 = arith.constant 0 : i32
    %c0_i32_1 = arith.constant 0 : i32
    %c0_i32_2 = arith.constant 0 : i32
    return %c0_i32, %c0_i32_0, %c0_i32_1 : i32, i32, i32
  }
  func.func @transform_2(%arg0: i32, %arg1: i32) -> (i32, i32) {
    %c0_i32 = arith.constant 0 : i32
    %c0_i32_0 = arith.constant 0 : i32
    %c0_i32_1 = arith.constant 0 : i32
    return %c0_i32, %c0_i32_0 : i32, i32
  }
  func.func @transform_3(%arg0: i32, %arg1: i32) -> (i32, i32) {
    %c0_i32 = arith.constant 0 : i32
    %c0_i32_0 = arith.constant 0 : i32
    %c0_i32_1 = arith.constant 0 : i32
    return %c0_i32, %c0_i32_0 : i32, i32
  }
  func.func @transform_4(%arg0: i32, %arg1: i32) -> (i32, i32) {
    %c0_i32 = arith.constant 0 : i32
    %c0_i32_0 = arith.constant 0 : i32
    %c0_i32_1 = arith.constant 0 : i32
    return %c0_i32, %c0_i32_0 : i32, i32
  }
  func.func @transform_5(%arg0: i32, %arg1: i32) -> (i32, i32, i32) {
    %c0_i32 = arith.constant 0 : i32
    %c0_i32_0 = arith.constant 0 : i32
    return %arg0, %arg1, %c0_i32 : i32, i32, i32
  }
}

</mosaic_0001>

<bundles_post_ra>
// kernel: conv2d_separable.1
= control target key start
LH: loop header
LB: loop body
LE: loop exit
PB: predicated region body
PF: predicated region fallthrough
CT: control target
= control target key end

     0   :  { %s1615_s18 = smov 0   ;;  %s1617_s19 = smov 0   ;;  %s2331_s0 = inlined_call_operand.vmem [shape: f32[4,10,18,4], index: 0, kind: input, shape index: {}]   ;;  %s2332_s1 = inlined_call_operand.vmem [shape: f32[3,3,4], index: 1, kind: input, shape index: {}]   ;;  %s2333_s2 = inlined_call_operand.vmem [shape: f32[1,4], index: 2, kind: input, shape index: {}]   ;;  %s2334_s3 = inlined_call_operand.vmem [shape: bf16[4,8], index: 3, kind: input, shape index: {}]   ;;  %s2335_s4 = inlined_call_operand.vmem [shape: f32[1,8], index: 4, kind: input, shape index: {}]   ;;  %s2336_s5 = inlined_call_operand.vmem [shape: f32[2,256,8], index: 5, kind: output, shape index: {}]  }
   0x1   :  { %s1619_s20 = smov 0   ;;  %s1621_s21 = smov 0  }
   0x2   :  { %s1623_s22 = smov 0  }
   0x3 LB: > { %s24_s23 = sadd.s32 1, %s1575_s20  ;;  %s27_s24 = sadd.s32 1, %s1579_s21  ;;  %s1583_s22 = sphi %s1623_s22, %s15_s22   ;;  %s1579_s21 = sphi %s1621_s21, %s2340_s21   ;;  %s1575_s20 = sphi %s1619_s20, %s2339_s20   ;;  %s1571_s19 = sphi %s1617_s19, %s2338_s19   ;;  %s1567_s18 = sphi %s1615_s18, %s2337_s18  }
   0x4   : > { %p25_p0 = scmp.ge.s32.totalorder %s24_s23, 2  ;;  %p1454_p1 = scmp.ge.s32.totalorder %s1583_s22, 1 }
   0x5   : > { %p209_p2 = scmp.lt.s32.totalorder %s1583_s22, 5 }
   0x6   : > { %s2342_s23 = smov (%p25_p0, %s24_s23), 0  ;;  %s2344_s24 = smov (!%p25_p0, %s27_s24), %s1579_s21 }
   0x7   : > { %p210_p3 = pnand %p1454_p1, %p209_p2  ;;  %p29_p4 = scmp.ge.s32.totalorder %s2344_s24, 2 }
   0x8   : > { %v1198_v0 = vld [vmem:[%s2334_s3] sm:$0x3] (!%p210_p3)  ;;  %vm1230_vm0 = vcmask (!%p210_p3), 1041408   ;;  %s1455_s27 = sshll.u32 (!%p210_p3), %s1571_s19, 1  ;;  %v298_v1 = vlaneseq (!%p210_p3)  ;;  %v294_v5 = vld [vmem:[%s2332_s1 + $0x4] sm:$0x7] (!%p210_p3) }
   0x9   : > { %s2346_s24 = smov (%p29_p4, %s2344_s24), 0  ;;  %213 = sbr.rel (%p210_p3) target bundleno = 399 (0x18f), region = 40 }
   0xa   : > { %1501 = vmatprep.subr.msk.bf16.mxu0 (!%p210_p3), %vm1230_vm0, %v1198_v0  ;;  %1502 = vmatprep.subr.msk.bf16.mxu1 (!%p210_p3), %vm1230_vm0, %v1198_v0  ;;  %v1232_v2 = vsel (!%p210_p3), %vm1230_vm0, %v1198_v0, 0  ;;  %s244_s28 = sadd.s32 (!%p210_p3), %s1567_s18, %s1455_s27  ;;  %v299_v3 = vshrl.u32 (!%p210_p3), %v298_v1, 7  ;;  %v293_v4 = vld [vmem:[%s2332_s1] sm:$0x7] (!%p210_p3)  ;;  %v295_v8 = vld [vmem:[%s2332_s1 + $0x8] sm:$0x7] (!%p210_p3) }
   0xb   : > { %1482 = vmatpush3.bf16.msra.mxu0 (!%p210_p3), %v1232_v2  ;;  %1500 = vmatpush3.bf16.msra.mxu1 (!%p210_p3), %v1232_v2  ;;  %p245_p5 = scmp.lt.s32.totalorder (!%p210_p3), %s244_s28, 3  ;;  %vm458_vm1 = vcmask (!%p210_p3), 1046528   ;;  %vm831_vm2 = vcmask (!%p210_p3), 1045504   ;;  %vm1205_vm3 = vcmask (!%p210_p3), 31744   ;;  %s1457_s25 = sshll.u32 (!%p210_p3), %s1567_s18, 4  ;;  %vm1347_vm4 = vcmask (!%p210_p3), 64512  }
   0xc   : > { %v300_v6 = vsub.s32 (!%p210_p3), 0, %v299_v3  ;;  %v408_v7 = vsub.s32 (!%p210_p3), 1, %v299_v3  ;;  %v781_v9 = vsub.s32 (!%p210_p3), 2, %v299_v3  ;;  %p253_p6 = scmp.lt.s32.totalorder (!%p210_p3), %s1571_s19, 1  ;;  %p255_p7 = scmp.lt.s32.totalorder (!%p210_p3), %s1457_s25, 31 }
   0xe   : > { %v1663_v10 = vrot.slane (!%p210_p3), %v293_v4, %v300_v6  ;;  %v1665_v11 = vrot.slane (!%p210_p3), %v293_v4, %v408_v7  ;;  %v1667_v12 = vrot.slane (!%p210_p3), %v294_v5, %v300_v6  ;;  %v1674_v13 = vrot.slane (!%p210_p3), %v295_v8, %v300_v6 }
   0xf   : > { %v1676_v14 = vrot.slane (!%p210_p3), %v294_v5, %v408_v7  ;;  %v1681_v18 = vrot.slane (!%p210_p3), %v295_v8, %v408_v7  ;;  %v1683_v19 = vrot.slane (!%p210_p3), %v293_v4, %v781_v9  ;;  %v1685_v20 = vrot.slane (!%p210_p3), %v294_v5, %v781_v9 }
  0x10   : > { %s2348_s28 = smov (!%p245_p5, %s244_s28), 3  ;;  %v1687_v21 = vrot.slane %v295_v8, %v781_v9  ;;  %s2350_s19 = smov (!%p253_p6, %s1571_s19), 1 }
  0x11   : > { %s1503_s10 = smul.u32 240, %s2348_s28  ;;  %s2352_s25 = smov (!%p255_p7, %s1457_s25), 31 }
  0x12   : > { %s1458_s26 = sshll.u32 %s2350_s19, 5 }
  0x13   : > { %s1672_s13 = scalar_lea.vmem %s2331_s0, %s1503_s10  ;;  %s258_s27 = sadd.s32 %s1458_s26, %s2352_s25 }
  0x14   : > { %v263_v15 = vld [vmem:[%s1672_s13] sm:$0xff]  ;;  %v264_v16 = vld [vmem:[%s1672_s13 + $0x8] sm:$0xff]  ;;  %v265_v17 = vld [vmem:[%s1672_s13 + $0x10] sm:$0x3]  ;;  %s1459_s30 = sshll.u32 %s258_s27, 3 }
  0x15   : > { %v1690_v22 = vld [vmem:[%s1672_s13 + $0x18] sm:$0xff]  ;;  %v1693_v23 = vld [vmem:[%s1672_s13 + $0x20] sm:$0xff]  ;;  %v1696_v24 = vld [vmem:[%s1672_s13 + $0x28] sm:$0x3]  ;;  %v302_v25 = vmul.f32 %v1663_v10, %v263_v15  ;;  %v303_v26 = vmul.f32 %v1663_v10, %v264_v16  ;;  %v410_v27 = vmul.f32 %v1665_v11, %v263_v15  ;;  %v411_v28 = vmul.f32 %v1665_v11, %v264_v16  ;;  %s2282_s8 = scalar_lea.vmem %s2336_s5, %s1459_s30 }
  0x16   : > { %v1703_v29 = vld [vmem:[%s1672_s13 + $0x30] sm:$0xff]  ;;  %v1706_v30 = vld [vmem:[%s1672_s13 + $0x38] sm:$0xff]  ;;  %v338_v31 = vmul.f32 %v1667_v12, %v1690_v22  ;;  %v339_v32 = vmul.f32 %v1667_v12, %v1693_v23  ;;  %v412_v33 = vmul.f32 %v1665_v11, %v265_v17  ;;  %v1715_v34 = vmul.f32 %v1665_v11, %v1696_v24  ;;  %v1723_v43 = vld [vmem:[%s1672_s13 + $0x40] sm:$0x3] }
  0x17   : > { %v374_v35 = vmul.f32 %v1674_v13, %v1703_v29  ;;  %v375_v36 = vmul.f32 %v1674_v13, %v1706_v30  ;;  %v459_v37 = vrot.slane %v410_v27, 1  ;;  %v460_v38 = vrot.slane %v411_v28, 1 }
  0x18   : > { %v354_v39 = vadd.f32 %v338_v31, %v302_v25  ;;  %v355_v40 = vadd.f32 %v339_v32, %v303_v26  ;;  %v462_v41 = vrot.slane %v412_v33, 1  ;;  %v467_v42 = vrot.slane %v1715_v34, 1 }
  0x19   : > { %v461_v44 = vsel %vm458_vm1, %v459_v37, %v460_v38  ;;  %v535_v45 = vmul.f32 %v1676_v14, %v1690_v22  ;;  %v536_v46 = vmul.f32 %v1676_v14, %v1693_v23  ;;  %v537_v47 = vmul.f32 %v1676_v14, %v1696_v24 }
  0x1a   : > { %v390_v48 = vadd.f32 %v374_v35, %v354_v39  ;;  %v391_v49 = vadd.f32 %v375_v36, %v355_v40  ;;  %v463_v50 = vsel %vm458_vm1, %v460_v38, %v462_v41  ;;  %v659_v51 = vmul.f32 %v1681_v18, %v1703_v29  ;;  %v1758_v35 = vld [vmem:[%s1672_s13 + $0x60] sm:$0xff]  ;;  %v1764_v40 = vld [vmem:[%s1672_s13 + $0x68] sm:$0xff]  ;;  %v1767_v41 = vld [vmem:[%s1672_s13 + $0x78] sm:$0xff] }
  0x1b   : > { %v583_v52 = vrot.slane %v535_v45, 1  ;;  %v584_v53 = vrot.slane %v536_v46, 1  ;;  %v586_v54 = vrot.slane %v537_v47, 1  ;;  %v660_v55 = vmul.f32 %v1681_v18, %v1706_v30 }
  0x1c   : > { %v515_v56 = vadd.f32 %v461_v44, %v390_v48  ;;  %v516_v57 = vadd.f32 %v463_v50, %v391_v49  ;;  %v661_v58 = vmul.f32 %v1681_v18, %v1723_v43  ;;  %v707_v59 = vrot.slane %v659_v51, 1  ;;  %v1771_v48 = vld [vmem:[%s1672_s13 + $0x80] sm:$0xff]  ;;  %v1774_v49 = vld [vmem:[%s1672_s13 + $0x90] sm:$0xff] }
  0x1d   : > { %v585_v60 = vsel %vm458_vm1, %v583_v52, %v584_v53  ;;  %v587_v61 = vsel %vm458_vm1, %v584_v53, %v586_v54  ;;  %v708_v62 = vrot.slane %v660_v55, 1  ;;  %v783_v63 = vmul.f32 %v1683_v19, %v263_v15  ;;  %v1778_v53 = vld [vmem:[%s1672_s13 + $0x98] sm:$0xff]  ;;  %v1785_v55 = vld [vmem:[%s2333_s2] ss:$0 sm:$0xff] }
  0x1e   : > { %v639_v0 = vadd.f32 %v585_v60, %v515_v56  ;;  %v640_v1 = vadd.f32 %v587_v61, %v516_v57  ;;  %v710_v2 = vrot.slane %v661_v58, 1  ;;  %v784_v3 = vmul.f32 %v1683_v19, %v264_v16  ;;  %v1789_v58 = vld [vmem:[%s1672_s13 + $0x70] sm:$0x3] }
  0x1f   : > { %v709_v4 = vsel %vm458_vm1, %v707_v59, %v708_v62  ;;  %v785_v5 = vmul.f32 %v1683_v19, %v265_v17  ;;  %v832_v6 = vrot.slane %v783_v63, 2  ;;  %v908_v7 = vmul.f32 %v1685_v20, %v1690_v22 }
  0x20   : > { %v711_v8 = vsel %vm458_vm1, %v708_v62, %v710_v2  ;;  %v763_v9 = vadd.f32 %v709_v4, %v639_v0  ;;  %v833_v25 = vrot.slane %v784_v3, 2  ;;  %v909_v15 = vmul.f32 %v1685_v20, %v1693_v23 }
  0x21   : > { %v764_v26 = vadd.f32 %v711_v8, %v640_v1  ;;  %v835_v16 = vrot.slane %v785_v5, 2  ;;  %v910_v27 = vmul.f32 %v1685_v20, %v1696_v24  ;;  %v956_v28 = vrot.slane %v908_v7, 2 }
  0x22   : > { %v834_v17 = vsel %vm831_vm2, %v832_v6, %v833_v25  ;;  %v957_v31 = vrot.slane %v909_v15, 2  ;;  %v1032_v32 = vmul.f32 %v1687_v21, %v1703_v29  ;;  %v1033_v33 = vmul.f32 %v1687_v21, %v1706_v30  ;;  %v1806_v6 = vld [vmem:[%s1672_s13 + $0x88] sm:$0x3] }
  0x23   : > { %v836_v36 = vsel %vm831_vm2, %v833_v25, %v835_v16  ;;  %v888_v37 = vadd.f32 %v834_v17, %v763_v9  ;;  %v959_v38 = vrot.slane %v910_v27, 2  ;;  %v1034_v39 = vmul.f32 %v1687_v21, %v1723_v43 }
  0x24   : > { %v889_v44 = vadd.f32 %v836_v36, %v764_v26  ;;  %v958_v45 = vsel %vm831_vm2, %v956_v28, %v957_v31  ;;  %v1080_v46 = vrot.slane %v1032_v32, 2  ;;  %v1081_v47 = vrot.slane %v1033_v33, 2  ;;  %v1816_v33 = vld [vmem:[%s1672_s13 + $0xa0] sm:$0x3] }
  0x25   : > { %v960_v50 = vsel %vm831_vm2, %v957_v31, %v959_v38  ;;  %v1012_v51 = vadd.f32 %v958_v45, %v888_v37  ;;  %v1083_v52 = vrot.slane %v1034_v39, 2  ;;  %v310_v54 = vmul.f32 %v1663_v10, %v1758_v35 }
  0x26   : > { %v1013_v56 = vadd.f32 %v960_v50, %v889_v44  ;;  %v1082_v57 = vsel %vm831_vm2, %v1080_v46, %v1081_v47  ;;  %v311_v59 = vmul.f32 %v1663_v10, %v1764_v40  ;;  %v346_v60 = vmul.f32 %v1667_v12, %v1767_v41 }
  0x27   : > { %v1084_v61 = vsel %vm831_vm2, %v1081_v47, %v1083_v52  ;;  %v1136_v62 = vadd.f32 %v1082_v57, %v1012_v51  ;;  %v347_v63 = vmul.f32 %v1667_v12, %v1771_v48  ;;  %v382_v0 = vmul.f32 %v1674_v13, %v1774_v49 }
  0x28   : > { %v1137_v1 = vadd.f32 %v1084_v61, %v1013_v56  ;;  %v362_v2 = vadd.f32 %v346_v60, %v310_v54  ;;  %v383_v3 = vmul.f32 %v1674_v13, %v1778_v53  ;;  %v422_v4 = vmul.f32 %v1665_v11, %v1758_v35 }
  0x29   : > { %v1158_v5 = vadd.f32 %v1785_v55, %v1136_v62  ;;  %v363_v7 = vadd.f32 %v347_v63, %v311_v59  ;;  %v423_v8 = vmul.f32 %v1665_v11, %v1764_v40  ;;  %v424_v9 = vmul.f32 %v1665_v11, %v1789_v58 }
  0x2a   : > { %v1159_v25 = vadd.f32 %v1785_v55, %v1137_v1  ;;  %v398_v15 = vadd.f32 %v382_v0, %v362_v2  ;;  %v479_v26 = vrot.slane %v422_v4, 1  ;;  %v547_v16 = vmul.f32 %v1676_v14, %v1767_v41 }
  0x2b   : > { %v1174_v27 = vmax.f32 %v1158_v5, 0.0  ;;  %v399_v28 = vadd.f32 %v383_v3, %v363_v7  ;;  %v480_v17 = vrot.slane %v423_v8, 1  ;;  %v482_v31 = vrot.slane %v424_v9, 1 }
  0x2c   : > { %v1175_v32 = vmax.f32 %v1159_v25, 0.0  ;;  %v548_v36 = vmul.f32 %v1676_v14, %v1771_v48  ;;  %v549_v37 = vmul.f32 %v1676_v14, %v1806_v6  ;;  %v603_v38 = vrot.slane %v547_v16, 1 }
  0x2d   : > { %v481_v39 = vsel %vm458_vm1, %v479_v26, %v480_v17  ;;  %v483_v44 = vsel %vm458_vm1, %v480_v17, %v482_v31  ;;  %v671_v45 = vmul.f32 %v1681_v18, %v1774_v49  ;;  %v672_v46 = vmul.f32 %v1681_v18, %v1778_v53 }
  0x2e   : > { %v1190_v47 = vpack.c.bf16 %v1175_v32, %v1174_v27  ;;  %v523_v50 = vadd.f32 %v481_v39, %v398_v15  ;;  %v524_v51 = vadd.f32 %v483_v44, %v399_v28  ;;  %v604_v52 = vrot.slane %v548_v36, 1 }
  0x2f   : > { %v606_v54 = vrot.slane %v549_v37, 1  ;;  %v673_v56 = vmul.f32 %v1681_v18, %v1816_v33  ;;  %v727_v57 = vrot.slane %v671_v45, 1  ;;  %v728_v59 = vrot.slane %v672_v46, 1  ;;  %v1856_v46 = vld [vmem:[%s1672_s13 + $0x48] sm:$0xff] }
  0x30   : > { %1483 = vmatprep.mubr.msk.bf16.mxu0 %vm1205_vm3, %v1190_v47  ;;  %v605_v60 = vsel %vm458_vm1, %v603_v38, %v604_v52  ;;  %v795_v61 = vmul.f32 %v1683_v19, %v1758_v35  ;;  %v796_v62 = vmul.f32 %v1683_v19, %v1764_v40  ;;  %v797_v63 = vmul.f32 %v1683_v19, %v1789_v58 }
  0x31   : > { %v607_v0 = vsel %vm458_vm1, %v604_v52, %v606_v54  ;;  %v647_v1 = vadd.f32 %v605_v60, %v523_v50  ;;  %v729_v2 = vsel %vm458_vm1, %v727_v57, %v728_v59  ;;  %v730_v3 = vrot.slane %v673_v56, 1 }
  0x32   : > { %v648_v4 = vadd.f32 %v607_v0, %v524_v51  ;;  %v852_v5 = vrot.slane %v795_v61, 2  ;;  %v853_v7 = vrot.slane %v796_v62, 2  ;;  %v855_v8 = vrot.slane %v797_v63, 2  ;;  %v1860_v51 = vld [vmem:[%s1672_s13 + $0x50] sm:$0xff] }
  0x33   : > { %v731_v9 = vsel %vm458_vm1, %v728_v59, %v730_v3  ;;  %v771_v25 = vadd.f32 %v729_v2, %v647_v1  ;;  %v920_v15 = vmul.f32 %v1685_v20, %v1767_v41  ;;  %v921_v26 = vmul.f32 %v1685_v20, %v1771_v48 }
  0x34   : > { %v772_v16 = vadd.f32 %v731_v9, %v648_v4  ;;  %v854_v27 = vsel %vm831_vm2, %v852_v5, %v853_v7  ;;  %v856_v28 = vsel %vm831_vm2, %v853_v7, %v855_v8  ;;  %v922_v17 = vmul.f32 %v1685_v20, %v1806_v6 }
  0x35   : > { %v896_v31 = vadd.f32 %v854_v27, %v771_v25  ;;  %v976_v32 = vrot.slane %v920_v15, 2  ;;  %v977_v36 = vrot.slane %v921_v26, 2  ;;  %v1044_v37 = vmul.f32 %v1687_v21, %v1774_v49 }
  0x36   : > { %v897_v38 = vadd.f32 %v856_v28, %v772_v16  ;;  %v979_v39 = vrot.slane %v922_v17, 2  ;;  %v1045_v44 = vmul.f32 %v1687_v21, %v1778_v53  ;;  %v1046_v45 = vmul.f32 %v1687_v21, %v1816_v33 }
  0x37   : > { %v978_v47 = vsel %vm831_vm2, %v976_v32, %v977_v36  ;;  %v1100_v50 = vrot.slane %v1044_v37, 2  ;;  %v304_v52 = vmul.f32 %v1663_v10, %v1690_v22  ;;  %v305_v54 = vmul.f32 %v1663_v10, %v1693_v23  ;;  %v1888_v32 = vld [vmem:[%s1672_s13 + $0x58] sm:$0x3] }
  0x38   : > { %v980_v56 = vsel %vm831_vm2, %v977_v36, %v979_v39  ;;  %v1020_v57 = vadd.f32 %v978_v47, %v896_v31  ;;  %v1101_v59 = vrot.slane %v1045_v44, 2  ;;  %v1103_v60 = vrot.slane %v1046_v45, 2 }
  0x39   : > { %v1021_v61 = vadd.f32 %v980_v56, %v897_v38  ;;  %v340_v62 = vmul.f32 %v1667_v12, %v1703_v29  ;;  %v341_v63 = vmul.f32 %v1667_v12, %v1706_v30  ;;  %v376_v0 = vmul.f32 %v1674_v13, %v1856_v46 }
  0x3a   : > { %v1102_v1 = vsel %vm831_vm2, %v1100_v50, %v1101_v59  ;;  %v1104_v2 = vsel %vm831_vm2, %v1101_v59, %v1103_v60  ;;  %v377_v3 = vmul.f32 %v1674_v13, %v1860_v51  ;;  %v413_v4 = vmul.f32 %v1665_v11, %v1690_v22 }
  0x3b   : > { %v1144_v5 = vadd.f32 %v1102_v1, %v1020_v57  ;;  %v1145_v7 = vadd.f32 %v1104_v2, %v1021_v61  ;;  %v356_v8 = vadd.f32 %v340_v62, %v304_v52  ;;  %v357_v9 = vadd.f32 %v341_v63, %v305_v54 }
  0x3c   : > { %v414_v25 = vmul.f32 %v1665_v11, %v1693_v23  ;;  %v464_v15 = vrot.slane %v413_v4, 1  ;;  %v538_v26 = vmul.f32 %v1676_v14, %v1703_v29  ;;  %v539_v16 = vmul.f32 %v1676_v14, %v1706_v30 }
  0x3d   : > { %v1166_v27 = vadd.f32 %v1785_v55, %v1144_v5  ;;  %v1167_v28 = vadd.f32 %v1785_v55, %v1145_v7  ;;  %v392_v17 = vadd.f32 %v376_v0, %v356_v8  ;;  %v393_v31 = vadd.f32 %v377_v3, %v357_v9 }
  0x3e   : > { %v465_v36 = vrot.slane %v414_v25, 1  ;;  %v540_v37 = vmul.f32 %v1676_v14, %v1723_v43  ;;  %v588_v38 = vrot.slane %v538_v26, 1  ;;  %v589_v39 = vrot.slane %v539_v16, 1 }
  0x3f   : > { %v1182_v44 = vmax.f32 %v1166_v27, 0.0  ;;  %v1183_v45 = vmax.f32 %v1167_v28, 0.0  ;;  %v662_v47 = vmul.f32 %v1681_v18, %v1856_v46  ;;  %v663_v50 = vmul.f32 %v1681_v18, %v1860_v51 }
  0x40   : > { %v466_v52 = vsel %vm458_vm1, %v464_v15, %v465_v36  ;;  %v468_v54 = vsel %vm458_vm1, %v465_v36, %v467_v42  ;;  %v590_v56 = vsel %vm458_vm1, %v588_v38, %v589_v39  ;;  %v591_v57 = vrot.slane %v540_v37, 1 }
  0x41   : > { %v1194_v59 = vpack.c.bf16 %v1183_v45, %v1182_v44  ;;  %v517_v60 = vadd.f32 %v466_v52, %v392_v17  ;;  %v518_v61 = vadd.f32 %v468_v54, %v393_v31  ;;  %v664_v62 = vmul.f32 %v1681_v18, %v1888_v32  ;;  %v1929_v54 = vld [vmem:[%s1672_s13 + $0xa8] sm:$0xff] }
  0x42   : > { %v592_v63 = vsel %vm458_vm1, %v589_v39, %v591_v57  ;;  %v712_v0 = vrot.slane %v662_v47, 1  ;;  %v713_v1 = vrot.slane %v663_v50, 1  ;;  %v786_v2 = vmul.f32 %v1683_v19, %v1690_v22 }
  0x43   : > { %1491 = vmatprep.mubr.msk.bf16.mxu1 %vm1205_vm3, %v1194_v59  ;;  %v641_v34 = vadd.f32 %v590_v56, %v517_v60  ;;  %v642_v42 = vadd.f32 %v592_v63, %v518_v61  ;;  %v715_v3 = vrot.slane %v664_v62, 1  ;;  %v787_v4 = vmul.f32 %v1683_v19, %v1693_v23  ;;  %v1933_v60 = vld [vmem:[%s1672_s13 + $0xb0] sm:$0xff] }
  0x44   : > { %v714_v5 = vsel %vm458_vm1, %v712_v0, %v713_v1  ;;  %v788_v7 = vmul.f32 %v1683_v19, %v1696_v24  ;;  %v837_v8 = vrot.slane %v786_v2, 2  ;;  %v911_v9 = vmul.f32 %v1685_v20, %v1703_v29 }
  0x45   : > { %v716_v25 = vsel %vm458_vm1, %v713_v1, %v715_v3  ;;  %v765_v22 = vadd.f32 %v714_v5, %v641_v34  ;;  %v838_v15 = vrot.slane %v787_v4, 2  ;;  %v912_v26 = vmul.f32 %v1685_v20, %v1706_v30 }
  0x46   : > { %v766_v16 = vadd.f32 %v716_v25, %v642_v42  ;;  %v840_v27 = vrot.slane %v788_v7, 2  ;;  %v913_v23 = vmul.f32 %v1685_v20, %v1723_v43  ;;  %v961_v28 = vrot.slane %v911_v9, 2 }
  0x47   : > { %v839_v24 = vsel %vm831_vm2, %v837_v8, %v838_v15  ;;  %v962_v17 = vrot.slane %v912_v26, 2  ;;  %v1035_v31 = vmul.f32 %v1687_v21, %v1856_v46  ;;  %v1036_v36 = vmul.f32 %v1687_v21, %v1860_v51 }
  0x48   : > { %v841_v37 = vsel %vm831_vm2, %v838_v15, %v840_v27  ;;  %v890_v38 = vadd.f32 %v839_v24, %v765_v22  ;;  %v964_v39 = vrot.slane %v913_v23, 2  ;;  %v1037_v44 = vmul.f32 %v1687_v21, %v1888_v32 }
  0x49   : > { %v891_v45 = vadd.f32 %v841_v37, %v766_v16  ;;  %v963_v47 = vsel %vm831_vm2, %v961_v28, %v962_v17  ;;  %v1085_v50 = vrot.slane %v1035_v31, 2  ;;  %v1086_v52 = vrot.slane %v1036_v36, 2  ;;  %v1960_v37 = vld [vmem:[%s1672_s13 + $0xb8] sm:$0x3] }
  0x4a   : > { %v965_v56 = vsel %vm831_vm2, %v962_v17, %v964_v39  ;;  %v1014_v57 = vadd.f32 %v963_v47, %v890_v38  ;;  %v1088_v59 = vrot.slane %v1037_v44, 2  ;;  %v312_v61 = vmul.f32 %v1663_v10, %v1767_v41 }
  0x4b   : > { %v1015_v62 = vadd.f32 %v965_v56, %v891_v45  ;;  %v1087_v63 = vsel %vm831_vm2, %v1085_v50, %v1086_v52  ;;  %v313_v0 = vmul.f32 %v1663_v10, %v1771_v48  ;;  %v348_v1 = vmul.f32 %v1667_v12, %v1774_v49 }
  0x4c   : > { %v1089_v2 = vsel %vm831_vm2, %v1086_v52, %v1088_v59  ;;  %v1138_v34 = vadd.f32 %v1087_v63, %v1014_v57  ;;  %v349_v42 = vmul.f32 %v1667_v12, %v1778_v53  ;;  %v384_v3 = vmul.f32 %v1674_v13, %v1929_v54 }
  0x4d   : > { %v1139_v4 = vadd.f32 %v1089_v2, %v1015_v62  ;;  %v364_v5 = vadd.f32 %v348_v1, %v312_v61  ;;  %v385_v7 = vmul.f32 %v1674_v13, %v1933_v60  ;;  %v425_v8 = vmul.f32 %v1665_v11, %v1767_v41 }
  0x4e   : > { %v1160_v9 = vadd.f32 %v1785_v55, %v1138_v34  ;;  %v365_v25 = vadd.f32 %v349_v42, %v313_v0  ;;  %v426_v22 = vmul.f32 %v1665_v11, %v1771_v48  ;;  %v427_v15 = vmul.f32 %v1665_v11, %v1806_v6 }
  0x4f   : > { %v1161_v26 = vadd.f32 %v1785_v55, %v1139_v4  ;;  %v400_v16 = vadd.f32 %v384_v3, %v364_v5  ;;  %v484_v27 = vrot.slane %v425_v8, 1  ;;  %v550_v23 = vmul.f32 %v1676_v14, %v1774_v49 }
  0x50   : > { %v1176_v28 = vmax.f32 %v1160_v9, 0.0  ;;  %v401_v24 = vadd.f32 %v385_v7, %v365_v25  ;;  %v485_v17 = vrot.slane %v426_v22, 1  ;;  %v487_v31 = vrot.slane %v427_v15, 1 }
  0x51   : > { %v1177_v36 = vmax.f32 %v1161_v26, 0.0  ;;  %v551_v38 = vmul.f32 %v1676_v14, %v1778_v53  ;;  %v552_v39 = vmul.f32 %v1676_v14, %v1816_v33  ;;  %v608_v44 = vrot.slane %v550_v23, 1 }
  0x52   : > { %v486_v45 = vsel %vm458_vm1, %v484_v27, %v485_v17  ;;  %v488_v47 = vsel %vm458_vm1, %v485_v17, %v487_v31  ;;  %v674_v50 = vmul.f32 %v1681_v18, %v1929_v54  ;;  %v675_v52 = vmul.f32 %v1681_v18, %v1933_v60 }
  0x53   : > { %v1191_v56 = vpack.c.bf16 %v1177_v36, %v1176_v28  ;;  %v525_v57 = vadd.f32 %v486_v45, %v400_v16  ;;  %v526_v59 = vadd.f32 %v488_v47, %v401_v24  ;;  %v609_v61 = vrot.slane %v551_v38, 1 }
  0x54   : > { %v611_v62 = vrot.slane %v552_v39, 1  ;;  %v676_v63 = vmul.f32 %v1681_v18, %v1960_v37  ;;  %v732_v0 = vrot.slane %v674_v50, 1  ;;  %v733_v1 = vrot.slane %v675_v52, 1 }
  0x55   : > { %1484 = vmatmul.mubr.msk.bf16.vlgmr.msra.gmra.mrb[0].mxu0 %vm1205_vm3, %v1191_v56  ;;  %v610_v2 = vsel %vm458_vm1, %v608_v44, %v609_v61  ;;  %v798_v34 = vmul.f32 %v1683_v19, %v1767_v41  ;;  %v799_v42 = vmul.f32 %v1683_v19, %v1771_v48  ;;  %v800_v3 = vmul.f32 %v1683_v19, %v1806_v6 }
  0x56   : > { %v612_v4 = vsel %vm458_vm1, %v609_v61, %v611_v62  ;;  %v649_v5 = vadd.f32 %v610_v2, %v525_v57  ;;  %v734_v7 = vsel %vm458_vm1, %v732_v0, %v733_v1  ;;  %v735_v8 = vrot.slane %v676_v63, 1 }
  0x57   : > { %v650_v9 = vadd.f32 %v612_v4, %v526_v59  ;;  %v857_v25 = vrot.slane %v798_v34, 2  ;;  %v858_v22 = vrot.slane %v799_v42, 2  ;;  %v860_v15 = vrot.slane %v800_v3, 2 }
  0x58   : > { %v736_v26 = vsel %vm458_vm1, %v733_v1, %v735_v8  ;;  %v773_v16 = vadd.f32 %v734_v7, %v649_v5  ;;  %v923_v27 = vmul.f32 %v1685_v20, %v1774_v49  ;;  %v924_v23 = vmul.f32 %v1685_v20, %v1778_v53 }
  0x59   : > { %v774_v28 = vadd.f32 %v736_v26, %v650_v9  ;;  %v859_v24 = vsel %vm831_vm2, %v857_v25, %v858_v22  ;;  %v861_v17 = vsel %vm831_vm2, %v858_v22, %v860_v15  ;;  %v925_v31 = vmul.f32 %v1685_v20, %v1816_v33 }
  0x5a   : > { %v898_v36 = vadd.f32 %v859_v24, %v773_v16  ;;  %v981_v38 = vrot.slane %v923_v27, 2  ;;  %v982_v39 = vrot.slane %v924_v23, 2  ;;  %v1047_v44 = vmul.f32 %v1687_v21, %v1929_v54 }
  0x5b   : > { %v899_v45 = vadd.f32 %v861_v17, %v774_v28  ;;  %v984_v47 = vrot.slane %v925_v31, 2  ;;  %v1048_v50 = vmul.f32 %v1687_v21, %v1933_v60  ;;  %v1049_v52 = vmul.f32 %v1687_v21, %v1960_v37 }
  0x5c   : > { %v983_v56 = vsel %vm831_vm2, %v981_v38, %v982_v39  ;;  %v1105_v57 = vrot.slane %v1047_v44, 2  ;;  %v306_v59 = vmul.f32 %v1663_v10, %v1703_v29  ;;  %v307_v61 = vmul.f32 %v1663_v10, %v1706_v30 }
  0x5d   : > { %v985_v62 = vsel %vm831_vm2, %v982_v39, %v984_v47  ;;  %v1022_v63 = vadd.f32 %v983_v56, %v898_v36  ;;  %v1106_v0 = vrot.slane %v1048_v50, 2  ;;  %v1108_v1 = vrot.slane %v1049_v52, 2 }
  0x5e   : > { %v1023_v2 = vadd.f32 %v985_v62, %v899_v45  ;;  %v342_v34 = vmul.f32 %v1667_v12, %v1856_v46  ;;  %v343_v42 = vmul.f32 %v1667_v12, %v1860_v51  ;;  %v378_v3 = vmul.f32 %v1674_v13, %v1758_v35 }
  0x5f   : > { %v1107_v4 = vsel %vm831_vm2, %v1105_v57, %v1106_v0  ;;  %v1109_v5 = vsel %vm831_vm2, %v1106_v0, %v1108_v1  ;;  %v379_v7 = vmul.f32 %v1674_v13, %v1764_v40  ;;  %v416_v8 = vmul.f32 %v1665_v11, %v1703_v29 }
  0x60   : > { %v1146_v9 = vadd.f32 %v1107_v4, %v1022_v63  ;;  %v1147_v25 = vadd.f32 %v1109_v5, %v1023_v2  ;;  %v358_v22 = vadd.f32 %v342_v34, %v306_v59  ;;  %v359_v15 = vadd.f32 %v343_v42, %v307_v61 }
  0x61   : > { %v417_v26 = vmul.f32 %v1665_v11, %v1706_v30  ;;  %v418_v16 = vmul.f32 %v1665_v11, %v1723_v43  ;;  %v469_v27 = vrot.slane %v416_v8, 1  ;;  %v541_v23 = vmul.f32 %v1676_v14, %v1856_v46 }
  0x62   : > { %v1168_v28 = vadd.f32 %v1785_v55, %v1146_v9  ;;  %v1169_v24 = vadd.f32 %v1785_v55, %v1147_v25  ;;  %v394_v17 = vadd.f32 %v378_v3, %v358_v22  ;;  %v395_v31 = vadd.f32 %v379_v7, %v359_v15 }
  0x63   : > { %v470_v36 = vrot.slane %v417_v26, 1  ;;  %v472_v38 = vrot.slane %v418_v16, 1  ;;  %v542_v39 = vmul.f32 %v1676_v14, %v1860_v51  ;;  %v543_v44 = vmul.f32 %v1676_v14, %v1888_v32 }
  0x64   : > { %v1184_v45 = vmax.f32 %v1168_v28, 0.0  ;;  %v1185_v47 = vmax.f32 %v1169_v24, 0.0  ;;  %v593_v50 = vrot.slane %v541_v23, 1  ;;  %v665_v52 = vmul.f32 %v1681_v18, %v1758_v35 }
  0x65   : > { %v471_v56 = vsel %vm458_vm1, %v469_v27, %v470_v36  ;;  %v473_v57 = vsel %vm458_vm1, %v470_v36, %v472_v38  ;;  %v594_v59 = vrot.slane %v542_v39, 1  ;;  %v596_v61 = vrot.slane %v543_v44, 1 }
  0x66   : > { %v1195_v62 = vpack.c.bf16 %v1185_v47, %v1184_v45  ;;  %v519_v63 = vadd.f32 %v471_v56, %v394_v17  ;;  %v520_v0 = vadd.f32 %v473_v57, %v395_v31  ;;  %v666_v1 = vmul.f32 %v1681_v18, %v1764_v40  ;;  %v2063_v57 = vld [vmem:[%s1672_s13 + $0xc0] sm:$0xff] }
  0x67   : > { %v595_v2 = vsel %vm458_vm1, %v593_v50, %v594_v59  ;;  %v597_v34 = vsel %vm458_vm1, %v594_v59, %v596_v61  ;;  %v667_v42 = vmul.f32 %v1681_v18, %v1789_v58  ;;  %v717_v3 = vrot.slane %v665_v52, 1 }
  0x68   : > { %1492 = vmatmul.mubr.msk.bf16.vlgmr.msra.gmra.mrb[0].mxu1 %vm1205_vm3, %v1195_v62  ;;  %v643_v4 = vadd.f32 %v595_v2, %v519_v63  ;;  %v644_v5 = vadd.f32 %v597_v34, %v520_v0  ;;  %v718_v7 = vrot.slane %v666_v1, 1  ;;  %v789_v8 = vmul.f32 %v1683_v19, %v1703_v29  ;;  %v2068_v63 = vld [vmem:[%s1672_s13 + $0xc8] sm:$0xff] }
  0x69   : > { %v720_v9 = vrot.slane %v667_v42, 1  ;;  %v790_v25 = vmul.f32 %v1683_v19, %v1706_v30  ;;  %v791_v22 = vmul.f32 %v1683_v19, %v1723_v43  ;;  %v914_v15 = vmul.f32 %v1685_v20, %v1856_v46 }
  0x6a   : > { %v719_v26 = vsel %vm458_vm1, %v717_v3, %v718_v7  ;;  %v842_v16 = vrot.slane %v789_v8, 2  ;;  %v915_v27 = vmul.f32 %v1685_v20, %v1860_v51  ;;  %v916_v23 = vmul.f32 %v1685_v20, %v1888_v32 }
  0x6b   : > { %v721_v29 = vsel %vm458_vm1, %v718_v7, %v720_v9  ;;  %v767_v28 = vadd.f32 %v719_v26, %v643_v4  ;;  %v843_v30 = vrot.slane %v790_v25, 2  ;;  %v845_v24 = vrot.slane %v791_v22, 2 }
  0x6c   : > { %v768_v17 = vadd.f32 %v721_v29, %v644_v5  ;;  %v966_v43 = vrot.slane %v914_v15, 2  ;;  %v967_v31 = vrot.slane %v915_v27, 2  ;;  %v969_v36 = vrot.slane %v916_v23, 2 }
  0x6d   : > { %v844_v38 = vsel %vm831_vm2, %v842_v16, %v843_v30  ;;  %v846_v39 = vsel %vm831_vm2, %v843_v30, %v845_v24  ;;  %v1038_v44 = vmul.f32 %v1687_v21, %v1758_v35  ;;  %v1039_v45 = vmul.f32 %v1687_v21, %v1764_v40 }
  0x6e   : > { %v892_v47 = vadd.f32 %v844_v38, %v767_v28  ;;  %v893_v50 = vadd.f32 %v846_v39, %v768_v17  ;;  %v968_v52 = vsel %vm831_vm2, %v966_v43, %v967_v31  ;;  %v970_v56 = vsel %vm831_vm2, %v967_v31, %v969_v36  ;;  %v2095_v39 = vld [vmem:[%s1672_s13 + $0xd0] sm:$0x3] }
  0x6f   : > { %v1040_v59 = vmul.f32 %v1687_v21, %v1789_v58  ;;  %v1090_v61 = vrot.slane %v1038_v44, 2  ;;  %v1091_v62 = vrot.slane %v1039_v45, 2  ;;  %v314_v0 = vmul.f32 %v1663_v10, %v1774_v49 }
  0x70   : > { %v1016_v1 = vadd.f32 %v968_v52, %v892_v47  ;;  %v1017_v2 = vadd.f32 %v970_v56, %v893_v50  ;;  %v315_v34 = vmul.f32 %v1663_v10, %v1778_v53  ;;  %v350_v42 = vmul.f32 %v1667_v12, %v1929_v54 }
  0x71   : > { %v1092_v3 = vsel %vm831_vm2, %v1090_v61, %v1091_v62  ;;  %v1093_v4 = vrot.slane %v1040_v59, 2  ;;  %v351_v5 = vmul.f32 %v1667_v12, %v1933_v60  ;;  %v386_v7 = vmul.f32 %v1674_v13, %v2063_v57 }
  0x72   : > { %v1140_v8 = vadd.f32 %v1092_v3, %v1016_v1  ;;  %v366_v9 = vadd.f32 %v350_v42, %v314_v0  ;;  %v387_v25 = vmul.f32 %v1674_v13, %v2068_v63  ;;  %v428_v22 = vmul.f32 %v1665_v11, %v1774_v49 }
  0x73   : > { %v1094_v15 = vsel %vm831_vm2, %v1091_v62, %v1093_v4  ;;  %v367_v26 = vadd.f32 %v351_v5, %v315_v34  ;;  %v429_v16 = vmul.f32 %v1665_v11, %v1778_v53  ;;  %v430_v27 = vmul.f32 %v1665_v11, %v1816_v33 }
  0x74   : > { %v1141_v23 = vadd.f32 %v1094_v15, %v1017_v2  ;;  %v1162_v29 = vadd.f32 %v1785_v55, %v1140_v8  ;;  %v402_v28 = vadd.f32 %v386_v7, %v366_v9  ;;  %v489_v30 = vrot.slane %v428_v22, 1 }
  0x75   : > { %v403_v24 = vadd.f32 %v387_v25, %v367_v26  ;;  %v490_v17 = vrot.slane %v429_v16, 1  ;;  %v492_v43 = vrot.slane %v430_v27, 1  ;;  %v553_v31 = vmul.f32 %v1676_v14, %v1929_v54 }
  0x76   : > { %v1163_v36 = vadd.f32 %v1785_v55, %v1141_v23  ;;  %v1178_v38 = vmax.f32 %v1162_v29, 0.0  ;;  %v554_v44 = vmul.f32 %v1676_v14, %v1933_v60  ;;  %v555_v45 = vmul.f32 %v1676_v14, %v1960_v37 }
  0x77   : > { %v491_v47 = vsel %vm458_vm1, %v489_v30, %v490_v17  ;;  %v493_v50 = vsel %vm458_vm1, %v490_v17, %v492_v43  ;;  %v613_v52 = vrot.slane %v553_v31, 1  ;;  %v677_v56 = vmul.f32 %v1681_v18, %v2063_v57 }
  0x78   : > { %v1179_v59 = vmax.f32 %v1163_v36, 0.0  ;;  %v527_v61 = vadd.f32 %v491_v47, %v402_v28  ;;  %v528_v62 = vadd.f32 %v493_v50, %v403_v24  ;;  %v614_v0 = vrot.slane %v554_v44, 1 }
  0x79   : > { %v616_v1 = vrot.slane %v555_v45, 1  ;;  %v678_v2 = vmul.f32 %v1681_v18, %v2068_v63  ;;  %v679_v34 = vmul.f32 %v1681_v18, %v2095_v39  ;;  %v737_v42 = vrot.slane %v677_v56, 1 }
  0x7a   : > { %v1192_v3 = vpack.c.bf16 %v1179_v59, %v1178_v38  ;;  %v615_v4 = vsel %vm458_vm1, %v613_v52, %v614_v0  ;;  %v801_v5 = vmul.f32 %v1683_v19, %v1774_v49  ;;  %v802_v7 = vmul.f32 %v1683_v19, %v1778_v53 }
  0x7b   : > { %v617_v8 = vsel %vm458_vm1, %v614_v0, %v616_v1  ;;  %v651_v9 = vadd.f32 %v615_v4, %v527_v61  ;;  %v738_v25 = vrot.slane %v678_v2, 1  ;;  %v740_v22 = vrot.slane %v679_v34, 1 }
  0x7c   : > { %1487 = vmatprep.mubr.msk.bf16.mxu0 %vm1205_vm3, %v1192_v3  ;;  %v652_v15 = vadd.f32 %v617_v8, %v528_v62  ;;  %v803_v26 = vmul.f32 %v1683_v19, %v1816_v33  ;;  %v862_v16 = vrot.slane %v801_v5, 2  ;;  %v863_v27 = vrot.slane %v802_v7, 2 }
  0x7d   : > { %v739_v23 = vsel %vm458_vm1, %v737_v42, %v738_v25  ;;  %v741_v49 = vsel %vm458_vm1, %v738_v25, %v740_v22  ;;  %v926_v53 = vmul.f32 %v1685_v20, %v1929_v54  ;;  %v927_v29 = vmul.f32 %v1685_v20, %v1933_v60 }
  0x7e   : > { %v775_v28 = vadd.f32 %v739_v23, %v651_v9  ;;  %v776_v30 = vadd.f32 %v741_v49, %v652_v15  ;;  %v864_v24 = vsel %vm831_vm2, %v862_v16, %v863_v27  ;;  %v865_v17 = vrot.slane %v803_v26, 2 }
  0x7f   : > { %v928_v33 = vmul.f32 %v1685_v20, %v1960_v37  ;;  %v986_v43 = vrot.slane %v926_v53, 2  ;;  %v987_v31 = vrot.slane %v927_v29, 2  ;;  %v1050_v36 = vmul.f32 %v1687_v21, %v2063_v57 }
  0x80   : > { %v866_v38 = vsel %vm831_vm2, %v863_v27, %v865_v17  ;;  %v900_v44 = vadd.f32 %v864_v24, %v775_v28  ;;  %v1051_v45 = vmul.f32 %v1687_v21, %v2068_v63  ;;  %v1052_v47 = vmul.f32 %v1687_v21, %v2095_v39 }
  0x81   : > { %v901_v50 = vadd.f32 %v866_v38, %v776_v30  ;;  %v988_v52 = vsel %vm831_vm2, %v986_v43, %v987_v31  ;;  %v989_v56 = vrot.slane %v928_v33, 2  ;;  %v1110_v59 = vrot.slane %v1050_v36, 2 }
  0x82   : > { %v1024_v61 = vadd.f32 %v988_v52, %v900_v44  ;;  %v1111_v62 = vrot.slane %v1051_v45, 2  ;;  %v1113_v0 = vrot.slane %v1052_v47, 2  ;;  %v308_v1 = vmul.f32 %v1663_v10, %v1856_v46 }
  0x83   : > { %v990_v2 = vsel %vm831_vm2, %v987_v31, %v989_v56  ;;  %v309_v34 = vmul.f32 %v1663_v10, %v1860_v51  ;;  %v344_v42 = vmul.f32 %v1667_v12, %v1758_v35  ;;  %v345_v3 = vmul.f32 %v1667_v12, %v1764_v40 }
  0x84   : > { %v1025_v4 = vadd.f32 %v990_v2, %v901_v50  ;;  %v1112_v5 = vsel %vm831_vm2, %v1110_v59, %v1111_v62  ;;  %v1114_v7 = vsel %vm831_vm2, %v1111_v62, %v1113_v0  ;;  %v380_v8 = vmul.f32 %v1674_v13, %v1767_v41 }
  0x85   : > { %v1148_v9 = vadd.f32 %v1112_v5, %v1024_v61  ;;  %v360_v25 = vadd.f32 %v344_v42, %v308_v1  ;;  %v361_v22 = vadd.f32 %v345_v3, %v309_v34  ;;  %v381_v15 = vmul.f32 %v1674_v13, %v1771_v48 }
  0x86   : > { %v1149_v26 = vadd.f32 %v1114_v7, %v1025_v4  ;;  %v419_v16 = vmul.f32 %v1665_v11, %v1856_v46  ;;  %v420_v27 = vmul.f32 %v1665_v11, %v1860_v51  ;;  %v421_v23 = vmul.f32 %v1665_v11, %v1888_v32 }
  0x87   : > { %v1170_v49 = vadd.f32 %v1785_v55, %v1148_v9  ;;  %v396_v53 = vadd.f32 %v380_v8, %v360_v25  ;;  %v397_v29 = vadd.f32 %v381_v15, %v361_v22  ;;  %v544_v28 = vmul.f32 %v1676_v14, %v1758_v35 }
  0x88   : > { %v1171_v30 = vadd.f32 %v1785_v55, %v1149_v26  ;;  %v474_v24 = vrot.slane %v419_v16, 1  ;;  %v475_v17 = vrot.slane %v420_v27, 1  ;;  %v477_v33 = vrot.slane %v421_v23, 1 }
  0x89   : > { %v1186_v43 = vmax.f32 %v1170_v49, 0.0  ;;  %v545_v31 = vmul.f32 %v1676_v14, %v1764_v40  ;;  %v546_v36 = vmul.f32 %v1676_v14, %v1789_v58  ;;  %v598_v38 = vrot.slane %v544_v28, 1 }
  0x8a   : > { %v1187_v44 = vmax.f32 %v1171_v30, 0.0  ;;  %v476_v45 = vsel %vm458_vm1, %v474_v24, %v475_v17  ;;  %v478_v47 = vsel %vm458_vm1, %v475_v17, %v477_v33  ;;  %v668_v50 = vmul.f32 %v1681_v18, %v1767_v41 }
  0x8b   : > { %v521_v52 = vadd.f32 %v476_v45, %v396_v53  ;;  %v522_v56 = vadd.f32 %v478_v47, %v397_v29  ;;  %v599_v59 = vrot.slane %v545_v31, 1  ;;  %v601_v61 = vrot.slane %v546_v36, 1 }
  0x8c   : > { %v1196_v62 = vpack.c.bf16 %v1187_v44, %v1186_v43  ;;  %v669_v0 = vmul.f32 %v1681_v18, %v1771_v48  ;;  %v670_v1 = vmul.f32 %v1681_v18, %v1806_v6  ;;  %v722_v2 = vrot.slane %v668_v50, 1  ;;  %v2203_v44 = vld [vmem:[%s1672_s13 + $0xe0] sm:$0xff] }
  0x8d   : > { %v600_v34 = vsel %vm458_vm1, %v598_v38, %v599_v59  ;;  %v602_v42 = vsel %vm458_vm1, %v599_v59, %v601_v61  ;;  %v792_v3 = vmul.f32 %v1683_v19, %v1856_v46  ;;  %v793_v4 = vmul.f32 %v1683_v19, %v1860_v51  ;;  %v2200_v38 = vld [vmem:[%s1672_s13 + $0xd8] sm:$0xff] }
  0x8e   : > { %1495 = vmatprep.mubr.msk.bf16.mxu1 %vm1205_vm3, %v1196_v62  ;;  %v645_v5 = vadd.f32 %v600_v34, %v521_v52  ;;  %v646_v7 = vadd.f32 %v602_v42, %v522_v56  ;;  %v723_v8 = vrot.slane %v669_v0, 1  ;;  %v725_v9 = vrot.slane %v670_v1, 1 }
  0x8f   : > { %v794_v25 = vmul.f32 %v1683_v19, %v1888_v32  ;;  %v847_v22 = vrot.slane %v792_v3, 2  ;;  %v848_v15 = vrot.slane %v793_v4, 2  ;;  %v917_v26 = vmul.f32 %v1685_v20, %v1758_v35 }
  0x90   : > { %v724_v16 = vsel %vm458_vm1, %v722_v2, %v723_v8  ;;  %v726_v46 = vsel %vm458_vm1, %v723_v8, %v725_v9  ;;  %v918_v51 = vmul.f32 %v1685_v20, %v1764_v40  ;;  %v919_v27 = vmul.f32 %v1685_v20, %v1789_v58 }
  0x91   : > { %v769_v23 = vadd.f32 %v724_v16, %v645_v5  ;;  %v770_v49 = vadd.f32 %v726_v46, %v646_v7  ;;  %v849_v32 = vsel %vm831_vm2, %v847_v22, %v848_v15  ;;  %v850_v53 = vrot.slane %v794_v25, 2  ;;  %v292_v46 = vld [vmem:[%s1672_s13 + $0xe8] sm:$0x3] }
  0x92   : > { %v971_v29 = vrot.slane %v917_v26, 2  ;;  %v972_v28 = vrot.slane %v918_v51, 2  ;;  %v974_v35 = vrot.slane %v919_v27, 2  ;;  %v1041_v30 = vmul.f32 %v1687_v21, %v1767_v41 }
  0x93   : > { %v851_v24 = vsel %vm831_vm2, %v848_v15, %v850_v53  ;;  %v894_v17 = vadd.f32 %v849_v32, %v769_v23  ;;  %v1042_v40 = vmul.f32 %v1687_v21, %v1771_v48  ;;  %v1043_v58 = vmul.f32 %v1687_v21, %v1806_v6 }
  0x94   : > { %v895_v33 = vadd.f32 %v851_v24, %v770_v49  ;;  %v973_v43 = vsel %vm831_vm2, %v971_v29, %v972_v28  ;;  %v975_v31 = vsel %vm831_vm2, %v972_v28, %v974_v35  ;;  %v1095_v36 = vrot.slane %v1041_v30, 2 }
  0x95   : > { %v1018_v41 = vadd.f32 %v973_v43, %v894_v17  ;;  %v1096_v45 = vrot.slane %v1042_v40, 2  ;;  %v1098_v47 = vrot.slane %v1043_v58, 2  ;;  %v316_v50 = vmul.f32 %v1663_v10, %v1929_v54 }
  0x96   : > { %v1019_v48 = vadd.f32 %v975_v31, %v895_v33  ;;  %v317_v6 = vmul.f32 %v1663_v10, %v1933_v60  ;;  %v352_v52 = vmul.f32 %v1667_v12, %v2063_v57  ;;  %v353_v56 = vmul.f32 %v1667_v12, %v2068_v63 }
  0x97   : > { %v1097_v59 = vsel %vm831_vm2, %v1095_v36, %v1096_v45  ;;  %v1099_v61 = vsel %vm831_vm2, %v1096_v45, %v1098_v47  ;;  %v388_v62 = vmul.f32 %v1674_v13, %v2200_v38  ;;  %v389_v0 = vmul.f32 %v1674_v13, %v2203_v44 }
  0x98   : > { %v1142_v1 = vadd.f32 %v1097_v59, %v1018_v41  ;;  %v1143_v2 = vadd.f32 %v1099_v61, %v1019_v48  ;;  %v368_v34 = vadd.f32 %v352_v52, %v316_v50  ;;  %v369_v10 = vadd.f32 %v353_v56, %v317_v6 }
  0x99   : > { %v431_v42 = vmul.f32 %v1665_v11, %v1929_v54  ;;  %v432_v12 = vmul.f32 %v1665_v11, %v1933_v60  ;;  %v433_v3 = vmul.f32 %v1665_v11, %v1960_v37  ;;  %v556_v4 = vmul.f32 %v1676_v14, %v2063_v57 }
  0x9a   : > { %v1164_v5 = vadd.f32 %v1785_v55, %v1142_v1  ;;  %v1165_v13 = vadd.f32 %v1785_v55, %v1143_v2  ;;  %v404_v7 = vadd.f32 %v388_v62, %v368_v34  ;;  %v405_v8 = vadd.f32 %v389_v0, %v369_v10 }
  0x9b   : > { %v494_v9 = vrot.slane %v431_v42, 1  ;;  %v495_v25 = vrot.slane %v432_v12, 1  ;;  %v497_v22 = vrot.slane %v433_v3, 1  ;;  %v557_v15 = vmul.f32 %v1676_v14, %v2068_v63 }
  0x9c   : > { %v1180_v26 = vmax.f32 %v1164_v5, 0.0  ;;  %v1181_v16 = vmax.f32 %v1165_v13, 0.0  ;;  %v558_v11 = vmul.f32 %v1676_v14, %v2095_v39  ;;  %v618_v51 = vrot.slane %v556_v4, 1 }
  0x9d   : > { %v496_v27 = vsel %vm458_vm1, %v494_v9, %v495_v25  ;;  %v498_v23 = vsel %vm458_vm1, %v495_v25, %v497_v22  ;;  %v619_v55 = vrot.slane %v557_v15, 1  ;;  %v680_v49 = vmul.f32 %v1681_v18, %v2200_v38  ;;  %v1461_v22 = vld [vmem:[%s2335_s4] ss:$0 sm:$0xff] }
  0x9e   : > { %v1193_v32 = vpack.c.bf16 %v1181_v16, %v1180_v26  ;;  %v529_v53 = vadd.f32 %v496_v27, %v404_v7  ;;  %v530_v29 = vadd.f32 %v498_v23, %v405_v8  ;;  %v621_v28 = vrot.slane %v558_v11, 1 }
  0x9f   : > { %v620_v35 = vsel %vm458_vm1, %v618_v51, %v619_v55  ;;  %v681_v30 = vmul.f32 %v1681_v18, %v2203_v44  ;;  %v682_v14 = vmul.f32 %v1681_v18, %v292_v46  ;;  %v742_v24 = vrot.slane %v680_v49, 1 }
  0xa0   : > { %1488 = vmatmul.mubr.msk.bf16.gmra.mrb[4].mxu0 %vm1205_vm3, %v1193_v32  ;;  %v622_v17 = vsel %vm458_vm1, %v619_v55, %v621_v28  ;;  %v653_v40 = vadd.f32 %v620_v35, %v529_v53  ;;  %v804_v58 = vmul.f32 %v1683_v19, %v1929_v54  ;;  %v805_v33 = vmul.f32 %v1683_v19, %v1933_v60 }
  0xa1   : > { %v654_v43 = vadd.f32 %v622_v17, %v530_v29  ;;  %v743_v31 = vrot.slane %v681_v30, 1  ;;  %v745_v36 = vrot.slane %v682_v14, 1  ;;  %v806_v41 = vmul.f32 %v1683_v19, %v1960_v37 }
  0xa2   : > { %v867_v45 = vrot.slane %v804_v58, 2  ;;  %v868_v18 = vrot.slane %v805_v33, 2  ;;  %v929_v47 = vmul.f32 %v1685_v20, %v2063_v57  ;;  %v930_v50 = vmul.f32 %v1685_v20, %v2068_v63 }
  0xa3   : > { %v744_v48 = vsel %vm458_vm1, %v742_v24, %v743_v31  ;;  %v746_v54 = vsel %vm458_vm1, %v743_v31, %v745_v36  ;;  %v870_v6 = vrot.slane %v806_v41, 2  ;;  %v931_v60 = vmul.f32 %v1685_v20, %v2095_v39 }
  0xa4   : > { %v777_v52 = vadd.f32 %v744_v48, %v653_v40  ;;  %v778_v56 = vadd.f32 %v746_v54, %v654_v43  ;;  %v869_v19 = vsel %vm831_vm2, %v867_v45, %v868_v18  ;;  %v991_v37 = vrot.slane %v929_v47, 2 }
  0xa5   : > { %v871_v59 = vsel %vm831_vm2, %v868_v18, %v870_v6  ;;  %v992_v61 = vrot.slane %v930_v50, 2  ;;  %v994_v57 = vrot.slane %v931_v60, 2  ;;  %v1053_v63 = vmul.f32 %v1687_v21, %v2200_v38 }
  0xa6   : > { %v902_v62 = vadd.f32 %v869_v19, %v777_v52  ;;  %v903_v0 = vadd.f32 %v871_v59, %v778_v56  ;;  %v1054_v1 = vmul.f32 %v1687_v21, %v2203_v44  ;;  %v1055_v2 = vmul.f32 %v1687_v21, %v292_v46  ;;  %v1544_v21 = vld [vmem:[%s2333_s2] ss:$0 sm:$0xff] }
  0xa7   : > { %v993_v20 = vsel %vm831_vm2, %v991_v37, %v992_v61  ;;  %v995_v39 = vsel %vm831_vm2, %v992_v61, %v994_v57  ;;  %v1115_v34 = vrot.slane %v1053_v63, 2 }
  0xa8   : > { %v1026_v10 = vadd.f32 %v993_v20, %v902_v62  ;;  %v1027_v42 = vadd.f32 %v995_v39, %v903_v0  ;;  %v1116_v12 = vrot.slane %v1054_v1, 2  ;;  %v1118_v3 = vrot.slane %v1055_v2, 2 }
  0xaa   : > { %v1117_v38 = vsel %vm831_vm2, %v1115_v34, %v1116_v12  ;;  %v1119_v4 = vsel %vm831_vm2, %v1116_v12, %v1118_v3 }
  0xab   : > { %v1150_v5 = vadd.f32 %v1117_v38, %v1026_v10  ;;  %v1151_v44 = vadd.f32 %v1119_v4, %v1027_v42 }
  0xad   : > { %v1172_v13 = vadd.f32 %v1544_v21, %v1150_v5  ;;  %v1173_v7 = vadd.f32 %v1544_v21, %v1151_v44 }
  0xaf   : > { %v1188_v8 = vmax.f32 %v1172_v13, 0.0  ;;  %v1189_v9 = vmax.f32 %v1173_v7, 0.0 }
  0xb1   : > { %v1197_v25 = vpack.c.bf16 %v1189_v9, %v1188_v8 }
  0xb3   : > { %1496 = vmatmul.mubr.msk.bf16.gmra.mrb[4].mxu1 %vm1205_vm3, %v1197_v25 }
 0x128   : > { %v1485_v15 = vpop.f32.mrb[0].mxu0 }
 0x129   : > { %v1277_v26 = vadd.f32 %v1485_v15, %v1461_v22  ;;  %v1268_v16 = vpop.f32.mrb[1].mxu0 }
 0x12a   : > { %v1269_v46 = vadd.f32 %v1461_v22, %v1268_v16  ;;  %v1486_v11 = vpop.f32.mrb[2].mxu0 }
 0x12b   : > { %v1333_v51 = vmax.f32 %v1277_v26, 0.0  ;;  %v1280_v27 = vadd.f32 %v1486_v11, %v1461_v22  ;;  %v1271_v23 = vpop.f32.mrb[3].mxu0 }
 0x12c   : > { %v1331_v55 = vmax.f32 %v1269_v46, 0.0  ;;  %v1272_v49 = vadd.f32 %v1461_v22, %v1271_v23 }
 0x12d   : > { %1350 = vst.msk [vmem:[%s2282_s8 + $0x10] sm:$0xff] %vm1347_vm4, %v1333_v51  ;;  %v1334_v32 = vmax.f32 %v1280_v27, 0.0 }
 0x12e   : > { %1348 = vst.msk [vmem:[%s2282_s8] sm:$0xff] %vm1347_vm4, %v1331_v55  ;;  %v1332_v53 = vmax.f32 %v1272_v49, 0.0 }
 0x12f   : > { %1351 = vst.msk [vmem:[%s2282_s8 + $0x18] sm:$0xff] %vm1347_vm4, %v1334_v32 }
 0x130   : > { %1349 = vst.msk [vmem:[%s2282_s8 + $0x8] sm:$0xff] %vm1347_vm4, %v1332_v53 }
 0x13b   : > { %v1493_v29 = vpop.f32.mrb[0].mxu1 }
 0x13c   : > { %v1309_v28 = vadd.f32 %v1493_v29, %v1461_v22  ;;  %v1300_v35 = vpop.f32.mrb[1].mxu1 }
 0x13d   : > { %v1301_v30 = vadd.f32 %v1461_v22, %v1300_v35  ;;  %v1494_v14 = vpop.f32.mrb[2].mxu1 }
 0x13e   : > { %v1341_v24 = vmax.f32 %v1309_v28, 0.0  ;;  %v1312_v17 = vadd.f32 %v1494_v14, %v1461_v22  ;;  %v1303_v40 = vpop.f32.mrb[3].mxu1 }
 0x13f   : > { %v1339_v58 = vmax.f32 %v1301_v30, 0.0  ;;  %v1304_v33 = vadd.f32 %v1461_v22, %v1303_v40 }
 0x140   : > { %1358 = vst.msk [vmem:[%s2282_s8 + $0x50] sm:$0xff] %vm1347_vm4, %v1341_v24  ;;  %v1342_v43 = vmax.f32 %v1312_v17, 0.0 }
 0x141   : > { %1356 = vst.msk [vmem:[%s2282_s8 + $0x40] sm:$0xff] %vm1347_vm4, %v1339_v58  ;;  %v1340_v31 = vmax.f32 %v1304_v33, 0.0 }
 0x142   : > { %1359 = vst.msk [vmem:[%s2282_s8 + $0x58] sm:$0xff] %vm1347_vm4, %v1342_v43 }
 0x143   : > { %1357 = vst.msk [vmem:[%s2282_s8 + $0x48] sm:$0xff] %vm1347_vm4, %v1340_v31 }
 0x173   : > { %v1489_v36 = vpop.f32.mrb[4].mxu0 }
 0x174   : > { %v1293_v41 = vadd.f32 %v1489_v36, %v1461_v22  ;;  %v1284_v45 = vpop.f32.mrb[5].mxu0 }
 0x175   : > { %v1285_v18 = vadd.f32 %v1461_v22, %v1284_v45  ;;  %v1490_v47 = vpop.f32.mrb[6].mxu0 }
 0x176   : > { %v1337_v50 = vmax.f32 %v1293_v41, 0.0  ;;  %v1296_v48 = vadd.f32 %v1490_v47, %v1461_v22  ;;  %v1287_v54 = vpop.f32.mrb[7].mxu0 }
 0x177   : > { %v1335_v6 = vmax.f32 %v1285_v18, 0.0  ;;  %v1288_v60 = vadd.f32 %v1461_v22, %v1287_v54 }
 0x178   : > { %1354 = vst.msk [vmem:[%s2282_s8 + $0x30] sm:$0xff] %vm1347_vm4, %v1337_v50  ;;  %v1338_v52 = vmax.f32 %v1296_v48, 0.0 }
 0x179   : > { %1352 = vst.msk [vmem:[%s2282_s8 + $0x20] sm:$0xff] %vm1347_vm4, %v1335_v6  ;;  %v1336_v56 = vmax.f32 %v1288_v60, 0.0 }
 0x17a   : > { %1355 = vst.msk [vmem:[%s2282_s8 + $0x38] sm:$0xff] %vm1347_vm4, %v1338_v52 }
 0x17b   : > { %1353 = vst.msk [vmem:[%s2282_s8 + $0x28] sm:$0xff] %vm1347_vm4, %v1336_v56 }
 0x186   : > { %v1497_v19 = vpop.f32.mrb[4].mxu1 }
 0x187   : > { %v1325_v37 = vadd.f32 %v1497_v19, %v1461_v22  ;;  %v1316_v59 = vpop.f32.mrb[5].mxu1 }
 0x188   : > { %v1317_v61 = vadd.f32 %v1461_v22, %v1316_v59  ;;  %v1498_v57 = vpop.f32.mrb[6].mxu1 }
 0x189   : > { %v1345_v63 = vmax.f32 %v1325_v37, 0.0  ;;  %v1328_v62 = vadd.f32 %v1498_v57, %v1461_v22  ;;  %v1319_v0 = vpop.f32.mrb[7].mxu1 }
 0x18a   : > { %v1343_v1 = vmax.f32 %v1317_v61, 0.0  ;;  %v1320_v2 = vadd.f32 %v1461_v22, %v1319_v0 }
 0x18b   : > { %1362 = vst.msk [vmem:[%s2282_s8 + $0x70] sm:$0xff] %vm1347_vm4, %v1345_v63  ;;  %v1346_v20 = vmax.f32 %v1328_v62, 0.0 }
 0x18c   : > { %1360 = vst.msk [vmem:[%s2282_s8 + $0x60] sm:$0xff] %vm1347_vm4, %v1343_v1  ;;  %v1344_v39 = vmax.f32 %v1320_v2, 0.0 }
 0x18d   : > { %1363 = vst.msk [vmem:[%s2282_s8 + $0x78] sm:$0xff] %vm1347_vm4, %v1346_v20 }
 0x18e   : > { %1361 = vst.msk [vmem:[%s2282_s8 + $0x68] sm:$0xff] %vm1347_vm4, %v1344_v39 }
 0x18f PF: > { %s15_s22 = sadd.s32 1, %s1583_s22   ;;  %s2337_s18 = smov %s1575_s20 }
 0x190   : > { %p12_p8 = scmp.ge.s32.totalorder %s15_s22, 6   ;;  %s2338_s19 = smov %s1579_s21 }
 0x191   : > { %s2339_s20 = smov %s2342_s23  ;;  %s2340_s21 = smov %s2346_s24 }
 0x192   :  { %14 = sbr.rel (!%p12_p8) target bundleno = 3 (0x3), region = 70 }

</bundles_post_ra>
